<compile_context>
chip_gen: v7x
topology: tpu7x:2x2x1
jax: 0.10.0
libtpu: 0.0.40
codegen_flags: <defaults>
</compile_context>

<pallas_src>
import jax
import jax.numpy as jnp
import numpy as np
from jax.experimental import pallas as pl
from jax.experimental.pallas import tpu as pltpu

BN_EPS = 1e-5
LANE = 128  # TPU lane width; feature dims are zero-padded to this


# ----------------------------------------------------------------------------
# Fused Pallas kernel (one grid step == one graph)
# ----------------------------------------------------------------------------
def _bn_relu(x, gamma, beta, inv_n):
  """Training-mode BatchNorm1d over axis 0 + ReLU.

  Single-pass sum / sum-of-squares statistics (x stays in vregs, both
  reductions read it once).  NOTE: E[x^2]-E[x]^2 in f32 can lose precision if
  |mean| >> std; acceptable here (post-BN activations are O(1)).
  """
  s = jnp.sum(x, axis=0, keepdims=True)
  ss = jnp.sum(x * x, axis=0, keepdims=True)
  mean = s * inv_n
  var = jnp.maximum(ss * inv_n - mean * mean, 0.0)   # biased variance
  scale = jax.lax.rsqrt(var + BN_EPS) * gamma
  shift = beta - mean * scale
  return jnp.maximum(x * scale + shift, 0.0)


def gin_fused_kernel(adj_ref, h0_ref, w1_ref, w2_ref, vec_ref,
                     eps_ref, pool_w_ref, pool_b_ref, out_ref):
  """All GIN layers + node_pool for one graph of the batch."""
  n = out_ref.shape[0]
  inv_n = 1.0 / float(n)
  num_layers = w1_ref.shape[0]

  # int8 0/1 adjacency -> bf16 (exact), cast once, stays resident for all layers
  adj = adj_ref[...].astype(jnp.bfloat16)      # [N, N]
  h = h0_ref[...]                              # [N, LANE] f32 running features

  # Small static unroll over GIN layers (typically 2-4).
  # TODO(synk): switch to lax.fori_loop with dynamic w1_ref[l] indexing if the
  #             layer count grows enough for live-range pressure to matter.
  for l in range(num_layers):
    w1 = w1_ref[l]                             # [LANE, LANE] bf16
    w2 = w2_ref[l]                             # [LANE, LANE] bf16
    vec = vec_ref[l]                           # [8, LANE] f32 packed BN params
    g1, be1 = vec[0:1], vec[1:2]
    ga, bea = vec[2:3], vec[3:4]
    gl, bel = vec[4:5], vec[5:6]

    # neighbor sum aggregation on the MXU (bf16 operands, f32 accumulation)
    agg = jnp.dot(adj, h.astype(jnp.bfloat16),
                  preferred_element_type=jnp.float32)
    z = (1.0 + eps_ref[l]) * h + agg
    # MLP layer 1 (+b1 dropped: cancelled exactly by the following BN)
    u1 = jnp.dot(z.astype(jnp.bfloat16), w1,
                 preferred_element_type=jnp.float32)
    h1 = _bn_relu(u1, g1, be1, inv_n)
    # MLP output linear (+b2 dropped: cancelled by BN)
    u2 = jnp.dot(h1.astype(jnp.bfloat16), w2,
                 preferred_element_type=jnp.float32)
    # ApplyNodeFunc BN + ReLU
    h2 = _bn_relu(u2, ga, bea, inv_n)
    # GIN.batch_norms[l] + ReLU
    h = _bn_relu(h2, gl, bel, inv_n)

    # node_pool (Conv1d over the layer axis, k=1) accumulated straight into
    # the output block — no separate acc temporary.
    if l == 0:
      out_ref[...] = pool_w_ref[l] * h
    else:
      out_ref[...] += pool_w_ref[l] * h

  out_ref[...] += pool_b_ref[0]   # lane-dense [N, 128] unmasked store


# ----------------------------------------------------------------------------
# Wrapper: pack/pad params lane-dense, single pallas_call with a graph grid
# ----------------------------------------------------------------------------
_SMEM = pl.BlockSpec(memory_space=pltpu.MemorySpace.SMEM)

_VEC_NAMES = ("g1", "be1", "ga", "bea", "gl", "bel")   # 6 used rows of 8


def _pad_cols(x, width):
  return jnp.pad(x, [(0, 0)] * (x.ndim - 1) + [(0, width - x.shape[-1])])


def _pad2(w, rows, cols):
  return jnp.pad(w, ((0, rows - w.shape[0]), (0, cols - w.shape[1])))


def _vmem_limit_bytes():
  """Generation-aware scoped-VMEM budget (leave headroom for compiler scratch)."""
  try:
    cap = getattr(pltpu.get_tpu_info(), "vmem_capacity_bytes", None)
    if cap:
      return int(cap * 3 // 4)   # ~96 MiB on v5e/v6e, ~48 MiB on v7x
  except Exception:
    pass
  return 48 * 1024 * 1024        # safe on all current generations


@jax.jit
def gin_forward(adj, h, layer_params, eps_list, pool_w, pool_b):
  """Batched GIN forward (use_classification=False), one fused kernel.

  adj: [B, N, N] 0/1 (float or int), h: [B, N, D].  Each graph in the batch is
  processed independently (its own BN statistics), matching running the
  original module per graph.
  """
  num_graphs, n = adj.shape[0], adj.shape[1]
  hidden = layer_params[0]["w1"].shape[1]
  assert n % 8 == 0, "node count must be a multiple of 8 (sublane width)"

  # Pack / pad everything once (cheap XLA prologue).  Zero-padding the feature
  # axis to 128 lanes is exact: padded columns stay identically 0 through
  # matmul, BN (gamma/beta padded with 0) and ReLU.
  adj_i8 = adj.astype(jnp.int8)                            # narrow 0/1 storage
  h0p = _pad_cols(h, LANE)                                 # [B, N, LANE] f32
  w1_stack = jnp.stack([_pad2(p["w1"], LANE, LANE) for p in layer_params]
                       ).astype(jnp.bfloat16)              # [L, LANE, LANE]
  w2_stack = jnp.stack([_pad2(p["w2"], LANE, LANE) for p in layer_params]
                       ).astype(jnp.bfloat16)              # [L, LANE, LANE]
  vec_stack = jnp.stack([
      jnp.concatenate(
          [_pad_cols(p[k], LANE) for k in _VEC_NAMES]
          + [jnp.zeros((8 - len(_VEC_NAMES), LANE), jnp.float32)], axis=0)
      for p in layer_params])                              # [L, 8, LANE] f32
  eps_arr = jnp.concatenate(eps_list).astype(jnp.float32)  # [L]
  num_layers = w1_stack.shape[0]

  # Advisory cost estimate so XLA schedules the prologue/epilogue around us.
  flops = num_graphs * num_layers * (2 * n * n * LANE + 2 * 2 * n * LANE * LANE)
  transcendentals = num_graphs * num_layers * 3 * LANE          # BN rsqrt
  bytes_accessed = (adj_i8.size + 4 * h0p.size + 4 * num_graphs * n * LANE
                    + 2 * w1_stack.size + 2 * w2_stack.size + 4 * vec_stack.size)

  out = pl.pallas_call(
      gin_fused_kernel,
      out_shape=jax.ShapeDtypeStruct((num_graphs, n, LANE), jnp.float32),
      grid=(num_graphs,),
      in_specs=[
          # per-graph blocks (leading axis squeezed), pipelined across the grid
          pl.BlockSpec((None, n, n), lambda g: (g, 0, 0)),           # adj  int8
          pl.BlockSpec((None, n, LANE), lambda g: (g, 0, 0)),        # h0   f32
          # shared weights: constant block index -> stays VMEM-resident
          pl.BlockSpec((num_layers, LANE, LANE), lambda g: (0, 0, 0)),
          pl.BlockSpec((num_layers, LANE, LANE), lambda g: (0, 0, 0)),
          pl.BlockSpec((num_layers, 8, LANE), lambda g: (0, 0, 0)),
          _SMEM,   # eps
          _SMEM,   # pool_w
          _SMEM,   # pool_b
      ],
      out_specs=pl.BlockSpec((None, n, LANE), lambda g: (g, 0, 0)),
      compiler_params=pltpu.CompilerParams(
          dimension_semantics=("parallel",),        # megacore split on v7x
          vmem_limit_bytes=_vmem_limit_bytes()),
      cost_estimate=pl.CostEstimate(
          flops=int(flops), transcendentals=int(transcendentals),
          bytes_accessed=int(bytes_accessed)),
  )(adj_i8, h0p, w1_stack, w2_stack, vec_stack, eps_arr, pool_w, pool_b)

  # Padded lanes contain pool_b; slice them away before anyone consumes this.
  return out[:, :, :hidden]


# ----------------------------------------------------------------------------
# Pure-JAX f32 reference (torch train-mode semantics) for correctness check
# ----------------------------------------------------------------------------
def _ref_bn_relu(x, gamma, beta):
  mean = jnp.mean(x, axis=0, keepdims=True)
  var = jnp.mean((x - mean) ** 2, axis=0, keepdims=True)
  return jnp.maximum((x - mean) / jnp.sqrt(var + BN_EPS) * gamma + beta, 0.0)


def _gin_ref_single(adj, h, layer_params, eps_list, pool_w, pool_b):
  reps = []
  for p, eps in zip(layer_params, eps_list):
    z = (1.0 + eps[0]) * h + adj @ h
    h1 = _ref_bn_relu(z @ p["w1"] + p["b1"], p["g1"], p["be1"])
    h2 = _ref_bn_relu(h1 @ p["w2"] + p["b2"], p["ga"], p["bea"])
    h = _ref_bn_relu(h2, p["gl"], p["bel"])
    reps.append(h)
  rep = jnp.stack(reps, axis=0)
  return jnp.einsum("l,lnh->nh", pool_w, rep) + pool_b[0]


def gin_forward_ref(adj, h, layer_params, eps_list, pool_w, pool_b):
  fn = lambda a, x: _gin_ref_single(a, x, layer_params, eps_list, pool_w, pool_b)
  return jax.vmap(fn)(adj, h)


# ----------------------------------------------------------------------------
# Deterministic parameter init + demo
# ----------------------------------------------------------------------------
def make_layer_params(key, in_dim, hidden_dim):
  ks = jax.random.split(key, 4)
  return {
      # nn.Linear weights stored already transposed to [in, out]
      "w1": jax.random.normal(ks[0], (in_dim, hidden_dim), jnp.float32)
            * (1.0 / np.sqrt(in_dim)),
      "b1": jax.random.normal(ks[1], (1, hidden_dim), jnp.float32) * 0.01,
      "w2": jax.random.normal(ks[2], (hidden_dim, hidden_dim), jnp.float32)
            * (1.0 / np.sqrt(hidden_dim)),
      "b2": jax.random.normal(ks[3], (1, hidden_dim), jnp.float32) * 0.01,
      # BatchNorm affine params (torch init: gamma=1, beta=0)
      "g1": jnp.ones((1, hidden_dim), jnp.float32),
      "be1": jnp.zeros((1, hidden_dim), jnp.float32),
      "ga": jnp.ones((1, hidden_dim), jnp.float32),
      "bea": jnp.zeros((1, hidden_dim), jnp.float32),
      "gl": jnp.ones((1, hidden_dim), jnp.float32),
      "bel": jnp.zeros((1, hidden_dim), jnp.float32),
  }


if __name__ == "__main__":
  # model config: num_layers=3 -> 2 GIN layers, num_mlp_layers=2
  NUM_LAYERS = 3
  INPUT_DIM = 16
  HIDDEN_DIM = 32
  N_NODES = 64
  N_GRAPHS = 4

  root = jax.random.PRNGKey(0)
  k_adj, k_h, k_p, k_pool = jax.random.split(root, 4)

  # batch of dense symmetric adjacencies (the graphs)
  adj_rand = jax.random.bernoulli(k_adj, p=0.15,
                                  shape=(N_GRAPHS, N_NODES, N_NODES))
  adj = jnp.maximum(adj_rand, jnp.swapaxes(adj_rand, -1, -2)).astype(jnp.float32)

  # node features
  h0 = jax.random.normal(k_h, (N_GRAPHS, N_NODES, INPUT_DIM), jnp.float32)

  # GIN layer parameters (shared across graphs)
  layer_keys = jax.random.split(k_p, NUM_LAYERS - 1)
  layer_params = []
  eps_list = []
  for i in range(NUM_LAYERS - 1):
    in_dim = INPUT_DIM if i == 0 else HIDDEN_DIM
    layer_params.append(make_layer_params(layer_keys[i], in_dim, HIDDEN_DIM))
    eps_list.append(jnp.zeros((1,), jnp.float32))  # GINConv eps init = 0

  # node_pool = Conv1d(in_channels=NUM_LAYERS-1, out_channels=1, kernel_size=1)
  pool_w = (jax.random.normal(k_pool, (NUM_LAYERS - 1,), jnp.float32)
            * (1.0 / np.sqrt(NUM_LAYERS - 1)))
  pool_b = jnp.zeros((1,), jnp.float32)

  h_out = gin_forward(adj, h0, layer_params, eps_list, pool_w, pool_b)
  h_out = jax.block_until_ready(h_out)

  h_ref = gin_forward_ref(adj, h0, layer_params, eps_list, pool_w, pool_b)
  # Tolerance accounts for bf16 matmul operands (f32 accumulation) compounded
  # across 3 BN+ReLU stages per layer vs the pure-f32 reference.
  np.testing.assert_allclose(np.asarray(h_out), np.asarray(h_ref),
                             rtol=7e-2, atol=7e-2)

  assert h_out.shape == (N_GRAPHS, N_NODES, HIDDEN_DIM)
  print("KERNEL_OK")
</pallas_src>

<mosaic_0001>
module attributes {stable_mosaic.version = 11 : i64} {
  func.func @gin_fused_kernel(%arg0: i32, %arg1: memref<1x64x64xi8, #tpu.memory_space<vmem>>, %arg2: memref<1x64x128xf32, #tpu.memory_space<vmem>>, %arg3: memref<2x128x128xbf16, #tpu.memory_space<vmem>>, %arg4: memref<2x128x128xbf16, #tpu.memory_space<vmem>>, %arg5: memref<2x8x128xf32, #tpu.memory_space<vmem>>, %arg6: memref<2xf32, #tpu.memory_space<smem>>, %arg7: memref<2xf32, #tpu.memory_space<smem>>, %arg8: memref<1xf32, #tpu.memory_space<smem>>, %arg9: memref<1x64x128xf32, #tpu.memory_space<vmem>>) attributes {dimension_semantics = [#tpu.dimension_semantics<parallel>], iteration_bounds = array<i64: 4>, scalar_prefetch = 0 : i64, scratch_operands = 0 : i64, tpu.core_type = #tpu.core_type<tc>, window_params = [{transform_indices = @transform_0, window_bounds = array<i64: 1, 64, 64>}, {transform_indices = @transform_1, window_bounds = array<i64: 1, 64, 128>}, {pipeline_mode = #tpu.pipeline_mode<synchronous>, transform_indices = @transform_2, window_bounds = array<i64: 2, 128, 128>}, {pipeline_mode = #tpu.pipeline_mode<synchronous>, transform_indices = @transform_3, window_bounds = array<i64: 2, 128, 128>}, {pipeline_mode = #tpu.pipeline_mode<synchronous>, transform_indices = @transform_4, window_bounds = array<i64: 2, 8, 128>}, {transform_indices = @transform_5, window_bounds = array<i64: 2>}, {transform_indices = @transform_6, window_bounds = array<i64: 2>}, {transform_indices = @transform_7, window_bounds = array<i64: 1>}, {transform_indices = @transform_8, window_bounds = array<i64: 1, 64, 128>}]} {
    %c0 = arith.constant 0 : index
    %c0_0 = arith.constant 0 : index
    %c0_1 = arith.constant 0 : index
    %0 = vector.load %arg1[%c0, %c0_0, %c0_1] : memref<1x64x64xi8, #tpu.memory_space<vmem>>, vector<1x64x64xi8>
    %1 = vector.shape_cast %0 : vector<1x64x64xi8> to vector<64x64xi8>
    %2 = arith.sitofp %1 : vector<64x64xi8> to vector<64x64xbf16>
    %c0_2 = arith.constant 0 : index
    %c0_3 = arith.constant 0 : index
    %c0_4 = arith.constant 0 : index
    %3 = vector.load %arg2[%c0_2, %c0_3, %c0_4] : memref<1x64x128xf32, #tpu.memory_space<vmem>>, vector<1x64x128xf32>
    %4 = vector.shape_cast %3 : vector<1x64x128xf32> to vector<64x128xf32>
    %c0_5 = arith.constant 0 : index
    %c0_6 = arith.constant 0 : index
    %c0_7 = arith.constant 0 : index
    %5 = vector.load %arg3[%c0_5, %c0_6, %c0_7] : memref<2x128x128xbf16, #tpu.memory_space<vmem>>, vector<1x128x128xbf16>
    %6 = vector.shape_cast %5 : vector<1x128x128xbf16> to vector<128x128xbf16>
    %c0_8 = arith.constant 0 : index
    %c0_9 = arith.constant 0 : index
    %c0_10 = arith.constant 0 : index
    %7 = vector.load %arg4[%c0_8, %c0_9, %c0_10] : memref<2x128x128xbf16, #tpu.memory_space<vmem>>, vector<1x128x128xbf16>
    %8 = vector.shape_cast %7 : vector<1x128x128xbf16> to vector<128x128xbf16>
    %c0_11 = arith.constant 0 : index
    %c0_12 = arith.constant 0 : index
    %c0_13 = arith.constant 0 : index
    %9 = vector.load %arg5[%c0_11, %c0_12, %c0_13] : memref<2x8x128xf32, #tpu.memory_space<vmem>>, vector<1x8x128xf32>
    %10 = vector.shape_cast %9 : vector<1x8x128xf32> to vector<8x128xf32>
    %11 = vector.extract_strided_slice %10 {offsets = [0, 0], sizes = [1, 128], strides = [1, 1]} : vector<8x128xf32> to vector<1x128xf32>
    %12 = vector.extract_strided_slice %10 {offsets = [1, 0], sizes = [1, 128], strides = [1, 1]} : vector<8x128xf32> to vector<1x128xf32>
    %13 = vector.extract_strided_slice %10 {offsets = [2, 0], sizes = [1, 128], strides = [1, 1]} : vector<8x128xf32> to vector<1x128xf32>
    %14 = vector.extract_strided_slice %10 {offsets = [3, 0], sizes = [1, 128], strides = [1, 1]} : vector<8x128xf32> to vector<1x128xf32>
    %15 = vector.extract_strided_slice %10 {offsets = [4, 0], sizes = [1, 128], strides = [1, 1]} : vector<8x128xf32> to vector<1x128xf32>
    %16 = vector.extract_strided_slice %10 {offsets = [5, 0], sizes = [1, 128], strides = [1, 1]} : vector<8x128xf32> to vector<1x128xf32>
    %17 = arith.truncf %4 : vector<64x128xf32> to vector<64x128xbf16>
    %cst = arith.constant dense<0.000000e+00> : vector<64x128xf32>
    %18 = tpu.matmul %2, %17, %cst {dimension_numbers = #tpu.dot_dimension_numbers<[1], [0], [0], [1], [0, 0, 1, 1], [], []>} : vector<64x64xbf16>, vector<64x128xbf16>, vector<64x128xf32> -> vector<64x128xf32>
    %c0_14 = arith.constant 0 : index
    %19 = memref.load %arg6[%c0_14] : memref<2xf32, #tpu.memory_space<smem>>
    %cst_15 = arith.constant 1.000000e+00 : f32
    %20 = arith.addf %cst_15, %19 : f32
    %21 = vector.broadcast %20 : f32 to vector<64x128xf32>
    %22 = arith.mulf %21, %4 : vector<64x128xf32>
    %23 = arith.addf %22, %18 : vector<64x128xf32>
    %24 = arith.truncf %23 : vector<64x128xf32> to vector<64x128xbf16>
    %cst_16 = arith.constant dense<0.000000e+00> : vector<64x128xf32>
    %25 = tpu.matmul %24, %6, %cst_16 {dimension_numbers = #tpu.dot_dimension_numbers<[1], [0], [0], [1], [0, 0, 1, 1], [], []>} : vector<64x128xbf16>, vector<128x128xbf16>, vector<64x128xf32> -> vector<64x128xf32>
    %cst_17 = arith.constant dense<0.000000e+00> : vector<128xf32>
    %26 = vector.multi_reduction <add>, %25, %cst_17 [0] : vector<64x128xf32> to vector<128xf32>
    %27 = vector.shape_cast %26 : vector<128xf32> to vector<1x128xf32>
    %28 = arith.mulf %25, %25 : vector<64x128xf32>
    %cst_18 = arith.constant dense<0.000000e+00> : vector<128xf32>
    %29 = vector.multi_reduction <add>, %28, %cst_18 [0] : vector<64x128xf32> to vector<128xf32>
    %30 = vector.shape_cast %29 : vector<128xf32> to vector<1x128xf32>
    %cst_19 = arith.constant 1.562500e-02 : f32
    %31 = vector.broadcast %cst_19 : f32 to vector<1x128xf32>
    %32 = arith.mulf %27, %31 : vector<1x128xf32>
    %cst_20 = arith.constant 1.562500e-02 : f32
    %33 = vector.broadcast %cst_20 : f32 to vector<1x128xf32>
    %34 = arith.mulf %30, %33 : vector<1x128xf32>
    %35 = arith.mulf %32, %32 : vector<1x128xf32>
    %36 = arith.subf %34, %35 : vector<1x128xf32>
    %cst_21 = arith.constant 0.000000e+00 : f32
    %37 = vector.broadcast %cst_21 : f32 to vector<1x128xf32>
    %38 = arith.maximumf %36, %37 : vector<1x128xf32>
    %cst_22 = arith.constant 9.99999974E-6 : f32
    %39 = vector.broadcast %cst_22 : f32 to vector<1x128xf32>
    %40 = arith.addf %38, %39 : vector<1x128xf32>
    %41 = math.rsqrt %40 : vector<1x128xf32>
    %42 = arith.mulf %41, %11 : vector<1x128xf32>
    %43 = arith.mulf %32, %42 : vector<1x128xf32>
    %44 = arith.subf %12, %43 : vector<1x128xf32>
    %45 = vector.broadcast %42 : vector<1x128xf32> to vector<64x128xf32>
    %46 = arith.mulf %25, %45 : vector<64x128xf32>
    %47 = vector.broadcast %44 : vector<1x128xf32> to vector<64x128xf32>
    %48 = arith.addf %46, %47 : vector<64x128xf32>
    %cst_23 = arith.constant 0.000000e+00 : f32
    %49 = vector.broadcast %cst_23 : f32 to vector<64x128xf32>
    %50 = arith.maximumf %48, %49 : vector<64x128xf32>
    %51 = arith.truncf %50 : vector<64x128xf32> to vector<64x128xbf16>
    %cst_24 = arith.constant dense<0.000000e+00> : vector<64x128xf32>
    %52 = tpu.matmul %51, %8, %cst_24 {dimension_numbers = #tpu.dot_dimension_numbers<[1], [0], [0], [1], [0, 0, 1, 1], [], []>} : vector<64x128xbf16>, vector<128x128xbf16>, vector<64x128xf32> -> vector<64x128xf32>
    %cst_25 = arith.constant dense<0.000000e+00> : vector<128xf32>
    %53 = vector.multi_reduction <add>, %52, %cst_25 [0] : vector<64x128xf32> to vector<128xf32>
    %54 = vector.shape_cast %53 : vector<128xf32> to vector<1x128xf32>
    %55 = arith.mulf %52, %52 : vector<64x128xf32>
    %cst_26 = arith.constant dense<0.000000e+00> : vector<128xf32>
    %56 = vector.multi_reduction <add>, %55, %cst_26 [0] : vector<64x128xf32> to vector<128xf32>
    %57 = vector.shape_cast %56 : vector<128xf32> to vector<1x128xf32>
    %cst_27 = arith.constant 1.562500e-02 : f32
    %58 = vector.broadcast %cst_27 : f32 to vector<1x128xf32>
    %59 = arith.mulf %54, %58 : vector<1x128xf32>
    %cst_28 = arith.constant 1.562500e-02 : f32
    %60 = vector.broadcast %cst_28 : f32 to vector<1x128xf32>
    %61 = arith.mulf %57, %60 : vector<1x128xf32>
    %62 = arith.mulf %59, %59 : vector<1x128xf32>
    %63 = arith.subf %61, %62 : vector<1x128xf32>
    %cst_29 = arith.constant 0.000000e+00 : f32
    %64 = vector.broadcast %cst_29 : f32 to vector<1x128xf32>
    %65 = arith.maximumf %63, %64 : vector<1x128xf32>
    %cst_30 = arith.constant 9.99999974E-6 : f32
    %66 = vector.broadcast %cst_30 : f32 to vector<1x128xf32>
    %67 = arith.addf %65, %66 : vector<1x128xf32>
    %68 = math.rsqrt %67 : vector<1x128xf32>
    %69 = arith.mulf %68, %13 : vector<1x128xf32>
    %70 = arith.mulf %59, %69 : vector<1x128xf32>
    %71 = arith.subf %14, %70 : vector<1x128xf32>
    %72 = vector.broadcast %69 : vector<1x128xf32> to vector<64x128xf32>
    %73 = arith.mulf %52, %72 : vector<64x128xf32>
    %74 = vector.broadcast %71 : vector<1x128xf32> to vector<64x128xf32>
    %75 = arith.addf %73, %74 : vector<64x128xf32>
    %cst_31 = arith.constant 0.000000e+00 : f32
    %76 = vector.broadcast %cst_31 : f32 to vector<64x128xf32>
    %77 = arith.maximumf %75, %76 : vector<64x128xf32>
    %cst_32 = arith.constant dense<0.000000e+00> : vector<128xf32>
    %78 = vector.multi_reduction <add>, %77, %cst_32 [0] : vector<64x128xf32> to vector<128xf32>
    %79 = vector.shape_cast %78 : vector<128xf32> to vector<1x128xf32>
    %80 = arith.mulf %77, %77 : vector<64x128xf32>
    %cst_33 = arith.constant dense<0.000000e+00> : vector<128xf32>
    %81 = vector.multi_reduction <add>, %80, %cst_33 [0] : vector<64x128xf32> to vector<128xf32>
    %82 = vector.shape_cast %81 : vector<128xf32> to vector<1x128xf32>
    %cst_34 = arith.constant 1.562500e-02 : f32
    %83 = vector.broadcast %cst_34 : f32 to vector<1x128xf32>
    %84 = arith.mulf %79, %83 : vector<1x128xf32>
    %cst_35 = arith.constant 1.562500e-02 : f32
    %85 = vector.broadcast %cst_35 : f32 to vector<1x128xf32>
    %86 = arith.mulf %82, %85 : vector<1x128xf32>
    %87 = arith.mulf %84, %84 : vector<1x128xf32>
    %88 = arith.subf %86, %87 : vector<1x128xf32>
    %cst_36 = arith.constant 0.000000e+00 : f32
    %89 = vector.broadcast %cst_36 : f32 to vector<1x128xf32>
    %90 = arith.maximumf %88, %89 : vector<1x128xf32>
    %cst_37 = arith.constant 9.99999974E-6 : f32
    %91 = vector.broadcast %cst_37 : f32 to vector<1x128xf32>
    %92 = arith.addf %90, %91 : vector<1x128xf32>
    %93 = math.rsqrt %92 : vector<1x128xf32>
    %94 = arith.mulf %93, %15 : vector<1x128xf32>
    %95 = arith.mulf %84, %94 : vector<1x128xf32>
    %96 = arith.subf %16, %95 : vector<1x128xf32>
    %97 = vector.broadcast %94 : vector<1x128xf32> to vector<64x128xf32>
    %98 = arith.mulf %77, %97 : vector<64x128xf32>
    %99 = vector.broadcast %96 : vector<1x128xf32> to vector<64x128xf32>
    %100 = arith.addf %98, %99 : vector<64x128xf32>
    %cst_38 = arith.constant 0.000000e+00 : f32
    %101 = vector.broadcast %cst_38 : f32 to vector<64x128xf32>
    %102 = arith.maximumf %100, %101 : vector<64x128xf32>
    %c0_39 = arith.constant 0 : index
    %103 = memref.load %arg7[%c0_39] : memref<2xf32, #tpu.memory_space<smem>>
    %104 = vector.broadcast %103 : f32 to vector<64x128xf32>
    %105 = arith.mulf %104, %102 : vector<64x128xf32>
    %c0_40 = arith.constant 0 : index
    %c0_41 = arith.constant 0 : index
    %c0_42 = arith.constant 0 : index
    %106 = vector.load %arg9[%c0_40, %c0_41, %c0_42] : memref<1x64x128xf32, #tpu.memory_space<vmem>>, vector<1x64x128xf32>
    %107 = vector.shape_cast %106 : vector<1x64x128xf32> to vector<64x128xf32>
    %108 = vector.shape_cast %105 : vector<64x128xf32> to vector<1x64x128xf32>
    tpu.vector_store %arg9[%c0_40, %c0_41, %c0_42], %108 {strides = array<i32>} : memref<1x64x128xf32, #tpu.memory_space<vmem>>, vector<1x64x128xf32>,
    %c1 = arith.constant 1 : index
    %c0_43 = arith.constant 0 : index
    %c0_44 = arith.constant 0 : index
    %109 = vector.load %arg3[%c1, %c0_43, %c0_44] : memref<2x128x128xbf16, #tpu.memory_space<vmem>>, vector<1x128x128xbf16>
    %110 = vector.shape_cast %109 : vector<1x128x128xbf16> to vector<128x128xbf16>
    %c1_45 = arith.constant 1 : index
    %c0_46 = arith.constant 0 : index
    %c0_47 = arith.constant 0 : index
    %111 = vector.load %arg4[%c1_45, %c0_46, %c0_47] : memref<2x128x128xbf16, #tpu.memory_space<vmem>>, vector<1x128x128xbf16>
    %112 = vector.shape_cast %111 : vector<1x128x128xbf16> to vector<128x128xbf16>
    %c1_48 = arith.constant 1 : index
    %c0_49 = arith.constant 0 : index
    %c0_50 = arith.constant 0 : index
    %113 = vector.load %arg5[%c1_48, %c0_49, %c0_50] : memref<2x8x128xf32, #tpu.memory_space<vmem>>, vector<1x8x128xf32>
    %114 = vector.shape_cast %113 : vector<1x8x128xf32> to vector<8x128xf32>
    %115 = vector.extract_strided_slice %114 {offsets = [0, 0], sizes = [1, 128], strides = [1, 1]} : vector<8x128xf32> to vector<1x128xf32>
    %116 = vector.extract_strided_slice %114 {offsets = [1, 0], sizes = [1, 128], strides = [1, 1]} : vector<8x128xf32> to vector<1x128xf32>
    %117 = vector.extract_strided_slice %114 {offsets = [2, 0], sizes = [1, 128], strides = [1, 1]} : vector<8x128xf32> to vector<1x128xf32>
    %118 = vector.extract_strided_slice %114 {offsets = [3, 0], sizes = [1, 128], strides = [1, 1]} : vector<8x128xf32> to vector<1x128xf32>
    %119 = vector.extract_strided_slice %114 {offsets = [4, 0], sizes = [1, 128], strides = [1, 1]} : vector<8x128xf32> to vector<1x128xf32>
    %120 = vector.extract_strided_slice %114 {offsets = [5, 0], sizes = [1, 128], strides = [1, 1]} : vector<8x128xf32> to vector<1x128xf32>
    %121 = arith.truncf %102 : vector<64x128xf32> to vector<64x128xbf16>
    %cst_51 = arith.constant dense<0.000000e+00> : vector<64x128xf32>
    %122 = tpu.matmul %2, %121, %cst_51 {dimension_numbers = #tpu.dot_dimension_numbers<[1], [0], [0], [1], [0, 0, 1, 1], [], []>} : vector<64x64xbf16>, vector<64x128xbf16>, vector<64x128xf32> -> vector<64x128xf32>
    %c1_52 = arith.constant 1 : index
    %123 = memref.load %arg6[%c1_52] : memref<2xf32, #tpu.memory_space<smem>>
    %cst_53 = arith.constant 1.000000e+00 : f32
    %124 = arith.addf %cst_53, %123 : f32
    %125 = vector.broadcast %124 : f32 to vector<64x128xf32>
    %126 = arith.mulf %125, %102 : vector<64x128xf32>
    %127 = arith.addf %126, %122 : vector<64x128xf32>
    %128 = arith.truncf %127 : vector<64x128xf32> to vector<64x128xbf16>
    %cst_54 = arith.constant dense<0.000000e+00> : vector<64x128xf32>
    %129 = tpu.matmul %128, %110, %cst_54 {dimension_numbers = #tpu.dot_dimension_numbers<[1], [0], [0], [1], [0, 0, 1, 1], [], []>} : vector<64x128xbf16>, vector<128x128xbf16>, vector<64x128xf32> -> vector<64x128xf32>
    %cst_55 = arith.constant dense<0.000000e+00> : vector<128xf32>
    %130 = vector.multi_reduction <add>, %129, %cst_55 [0] : vector<64x128xf32> to vector<128xf32>
    %131 = vector.shape_cast %130 : vector<128xf32> to vector<1x128xf32>
    %132 = arith.mulf %129, %129 : vector<64x128xf32>
    %cst_56 = arith.constant dense<0.000000e+00> : vector<128xf32>
    %133 = vector.multi_reduction <add>, %132, %cst_56 [0] : vector<64x128xf32> to vector<128xf32>
    %134 = vector.shape_cast %133 : vector<128xf32> to vector<1x128xf32>
    %cst_57 = arith.constant 1.562500e-02 : f32
    %135 = vector.broadcast %cst_57 : f32 to vector<1x128xf32>
    %136 = arith.mulf %131, %135 : vector<1x128xf32>
    %cst_58 = arith.constant 1.562500e-02 : f32
    %137 = vector.broadcast %cst_58 : f32 to vector<1x128xf32>
    %138 = arith.mulf %134, %137 : vector<1x128xf32>
    %139 = arith.mulf %136, %136 : vector<1x128xf32>
    %140 = arith.subf %138, %139 : vector<1x128xf32>
    %cst_59 = arith.constant 0.000000e+00 : f32
    %141 = vector.broadcast %cst_59 : f32 to vector<1x128xf32>
    %142 = arith.maximumf %140, %141 : vector<1x128xf32>
    %cst_60 = arith.constant 9.99999974E-6 : f32
    %143 = vector.broadcast %cst_60 : f32 to vector<1x128xf32>
    %144 = arith.addf %142, %143 : vector<1x128xf32>
    %145 = math.rsqrt %144 : vector<1x128xf32>
    %146 = arith.mulf %145, %115 : vector<1x128xf32>
    %147 = arith.mulf %136, %146 : vector<1x128xf32>
    %148 = arith.subf %116, %147 : vector<1x128xf32>
    %149 = vector.broadcast %146 : vector<1x128xf32> to vector<64x128xf32>
    %150 = arith.mulf %129, %149 : vector<64x128xf32>
    %151 = vector.broadcast %148 : vector<1x128xf32> to vector<64x128xf32>
    %152 = arith.addf %150, %151 : vector<64x128xf32>
    %cst_61 = arith.constant 0.000000e+00 : f32
    %153 = vector.broadcast %cst_61 : f32 to vector<64x128xf32>
    %154 = arith.maximumf %152, %153 : vector<64x128xf32>
    %155 = arith.truncf %154 : vector<64x128xf32> to vector<64x128xbf16>
    %cst_62 = arith.constant dense<0.000000e+00> : vector<64x128xf32>
    %156 = tpu.matmul %155, %112, %cst_62 {dimension_numbers = #tpu.dot_dimension_numbers<[1], [0], [0], [1], [0, 0, 1, 1], [], []>} : vector<64x128xbf16>, vector<128x128xbf16>, vector<64x128xf32> -> vector<64x128xf32>
    %cst_63 = arith.constant dense<0.000000e+00> : vector<128xf32>
    %157 = vector.multi_reduction <add>, %156, %cst_63 [0] : vector<64x128xf32> to vector<128xf32>
    %158 = vector.shape_cast %157 : vector<128xf32> to vector<1x128xf32>
    %159 = arith.mulf %156, %156 : vector<64x128xf32>
    %cst_64 = arith.constant dense<0.000000e+00> : vector<128xf32>
    %160 = vector.multi_reduction <add>, %159, %cst_64 [0] : vector<64x128xf32> to vector<128xf32>
    %161 = vector.shape_cast %160 : vector<128xf32> to vector<1x128xf32>
    %cst_65 = arith.constant 1.562500e-02 : f32
    %162 = vector.broadcast %cst_65 : f32 to vector<1x128xf32>
    %163 = arith.mulf %158, %162 : vector<1x128xf32>
    %cst_66 = arith.constant 1.562500e-02 : f32
    %164 = vector.broadcast %cst_66 : f32 to vector<1x128xf32>
    %165 = arith.mulf %161, %164 : vector<1x128xf32>
    %166 = arith.mulf %163, %163 : vector<1x128xf32>
    %167 = arith.subf %165, %166 : vector<1x128xf32>
    %cst_67 = arith.constant 0.000000e+00 : f32
    %168 = vector.broadcast %cst_67 : f32 to vector<1x128xf32>
    %169 = arith.maximumf %167, %168 : vector<1x128xf32>
    %cst_68 = arith.constant 9.99999974E-6 : f32
    %170 = vector.broadcast %cst_68 : f32 to vector<1x128xf32>
    %171 = arith.addf %169, %170 : vector<1x128xf32>
    %172 = math.rsqrt %171 : vector<1x128xf32>
    %173 = arith.mulf %172, %117 : vector<1x128xf32>
    %174 = arith.mulf %163, %173 : vector<1x128xf32>
    %175 = arith.subf %118, %174 : vector<1x128xf32>
    %176 = vector.broadcast %173 : vector<1x128xf32> to vector<64x128xf32>
    %177 = arith.mulf %156, %176 : vector<64x128xf32>
    %178 = vector.broadcast %175 : vector<1x128xf32> to vector<64x128xf32>
    %179 = arith.addf %177, %178 : vector<64x128xf32>
    %cst_69 = arith.constant 0.000000e+00 : f32
    %180 = vector.broadcast %cst_69 : f32 to vector<64x128xf32>
    %181 = arith.maximumf %179, %180 : vector<64x128xf32>
    %cst_70 = arith.constant dense<0.000000e+00> : vector<128xf32>
    %182 = vector.multi_reduction <add>, %181, %cst_70 [0] : vector<64x128xf32> to vector<128xf32>
    %183 = vector.shape_cast %182 : vector<128xf32> to vector<1x128xf32>
    %184 = arith.mulf %181, %181 : vector<64x128xf32>
    %cst_71 = arith.constant dense<0.000000e+00> : vector<128xf32>
    %185 = vector.multi_reduction <add>, %184, %cst_71 [0] : vector<64x128xf32> to vector<128xf32>
    %186 = vector.shape_cast %185 : vector<128xf32> to vector<1x128xf32>
    %cst_72 = arith.constant 1.562500e-02 : f32
    %187 = vector.broadcast %cst_72 : f32 to vector<1x128xf32>
    %188 = arith.mulf %183, %187 : vector<1x128xf32>
    %cst_73 = arith.constant 1.562500e-02 : f32
    %189 = vector.broadcast %cst_73 : f32 to vector<1x128xf32>
    %190 = arith.mulf %186, %189 : vector<1x128xf32>
    %191 = arith.mulf %188, %188 : vector<1x128xf32>
    %192 = arith.subf %190, %191 : vector<1x128xf32>
    %cst_74 = arith.constant 0.000000e+00 : f32
    %193 = vector.broadcast %cst_74 : f32 to vector<1x128xf32>
    %194 = arith.maximumf %192, %193 : vector<1x128xf32>
    %cst_75 = arith.constant 9.99999974E-6 : f32
    %195 = vector.broadcast %cst_75 : f32 to vector<1x128xf32>
    %196 = arith.addf %194, %195 : vector<1x128xf32>
    %197 = math.rsqrt %196 : vector<1x128xf32>
    %198 = arith.mulf %197, %119 : vector<1x128xf32>
    %199 = arith.mulf %188, %198 : vector<1x128xf32>
    %200 = arith.subf %120, %199 : vector<1x128xf32>
    %201 = vector.broadcast %198 : vector<1x128xf32> to vector<64x128xf32>
    %202 = arith.mulf %181, %201 : vector<64x128xf32>
    %203 = vector.broadcast %200 : vector<1x128xf32> to vector<64x128xf32>
    %204 = arith.addf %202, %203 : vector<64x128xf32>
    %cst_76 = arith.constant 0.000000e+00 : f32
    %205 = vector.broadcast %cst_76 : f32 to vector<64x128xf32>
    %206 = arith.maximumf %204, %205 : vector<64x128xf32>
    %c0_77 = arith.constant 0 : index
    %c0_78 = arith.constant 0 : index
    %c0_79 = arith.constant 0 : index
    %207 = vector.load %arg9[%c0_77, %c0_78, %c0_79] : memref<1x64x128xf32, #tpu.memory_space<vmem>>, vector<1x64x128xf32>
    %208 = vector.shape_cast %207 : vector<1x64x128xf32> to vector<64x128xf32>
    %c1_80 = arith.constant 1 : index
    %209 = memref.load %arg7[%c1_80] : memref<2xf32, #tpu.memory_space<smem>>
    %210 = vector.broadcast %209 : f32 to vector<64x128xf32>
    %211 = arith.mulf %210, %206 : vector<64x128xf32>
    %212 = arith.addf %208, %211 : vector<64x128xf32>
    %c0_81 = arith.constant 0 : index
    %c0_82 = arith.constant 0 : index
    %c0_83 = arith.constant 0 : index
    %213 = vector.load %arg9[%c0_81, %c0_82, %c0_83] : memref<1x64x128xf32, #tpu.memory_space<vmem>>, vector<1x64x128xf32>
    %214 = vector.shape_cast %213 : vector<1x64x128xf32> to vector<64x128xf32>
    %215 = vector.shape_cast %212 : vector<64x128xf32> to vector<1x64x128xf32>
    tpu.vector_store %arg9[%c0_81, %c0_82, %c0_83], %215 {strides = array<i32>} : memref<1x64x128xf32, #tpu.memory_space<vmem>>, vector<1x64x128xf32>,
    %c0_84 = arith.constant 0 : index
    %c0_85 = arith.constant 0 : index
    %c0_86 = arith.constant 0 : index
    %216 = vector.load %arg9[%c0_84, %c0_85, %c0_86] : memref<1x64x128xf32, #tpu.memory_space<vmem>>, vector<1x64x128xf32>
    %217 = vector.shape_cast %216 : vector<1x64x128xf32> to vector<64x128xf32>
    %c0_87 = arith.constant 0 : index
    %218 = memref.load %arg8[%c0_87] : memref<1xf32, #tpu.memory_space<smem>>
    %219 = vector.broadcast %218 : f32 to vector<64x128xf32>
    %220 = arith.addf %217, %219 : vector<64x128xf32>
    %c0_88 = arith.constant 0 : index
    %c0_89 = arith.constant 0 : index
    %c0_90 = arith.constant 0 : index
    %221 = vector.load %arg9[%c0_88, %c0_89, %c0_90] : memref<1x64x128xf32, #tpu.memory_space<vmem>>, vector<1x64x128xf32>
    %222 = vector.shape_cast %221 : vector<1x64x128xf32> to vector<64x128xf32>
    %223 = vector.shape_cast %220 : vector<64x128xf32> to vector<1x64x128xf32>
    tpu.vector_store %arg9[%c0_88, %c0_89, %c0_90], %223 {strides = array<i32>} : memref<1x64x128xf32, #tpu.memory_space<vmem>>, vector<1x64x128xf32>,
    return
  }
  func.func @transform_0(%arg0: i32) -> (i32, i32, i32) {
    %c0_i32 = arith.constant 0 : i32
    %c0_i32_0 = arith.constant 0 : i32
    %c0_i32_1 = arith.constant 0 : i32
    return %arg0, %c0_i32, %c0_i32_0 : i32, i32, i32
  }
  func.func @transform_1(%arg0: i32) -> (i32, i32, i32) {
    %c0_i32 = arith.constant 0 : i32
    %c0_i32_0 = arith.constant 0 : i32
    %c0_i32_1 = arith.constant 0 : i32
    return %arg0, %c0_i32, %c0_i32_0 : i32, i32, i32
  }
  func.func @transform_2(%arg0: i32) -> (i32, i32, i32) {
    %c0_i32 = arith.constant 0 : i32
    %c0_i32_0 = arith.constant 0 : i32
    %c0_i32_1 = arith.constant 0 : i32
    %c0_i32_2 = arith.constant 0 : i32
    return %c0_i32, %c0_i32_0, %c0_i32_1 : i32, i32, i32
  }
  func.func @transform_3(%arg0: i32) -> (i32, i32, i32) {
    %c0_i32 = arith.constant 0 : i32
    %c0_i32_0 = arith.constant 0 : i32
    %c0_i32_1 = arith.constant 0 : i32
    %c0_i32_2 = arith.constant 0 : i32
    return %c0_i32, %c0_i32_0, %c0_i32_1 : i32, i32, i32
  }
  func.func @transform_4(%arg0: i32) -> (i32, i32, i32) {
    %c0_i32 = arith.constant 0 : i32
    %c0_i32_0 = arith.constant 0 : i32
    %c0_i32_1 = arith.constant 0 : i32
    %c0_i32_2 = arith.constant 0 : i32
    return %c0_i32, %c0_i32_0, %c0_i32_1 : i32, i32, i32
  }
  func.func @transform_5(%arg0: i32) -> i32 {
    %c0_i32 = arith.constant 0 : i32
    %c0_i32_0 = arith.constant 0 : i32
    return %c0_i32 : i32
  }
  func.func @transform_6(%arg0: i32) -> i32 {
    %c0_i32 = arith.constant 0 : i32
    %c0_i32_0 = arith.constant 0 : i32
    return %c0_i32 : i32
  }
  func.func @transform_7(%arg0: i32) -> i32 {
    %c0_i32 = arith.constant 0 : i32
    %c0_i32_0 = arith.constant 0 : i32
    return %c0_i32 : i32
  }
  func.func @transform_8(%arg0: i32) -> (i32, i32, i32) {
    %c0_i32 = arith.constant 0 : i32
    %c0_i32_0 = arith.constant 0 : i32
    %c0_i32_1 = arith.constant 0 : i32
    return %arg0, %c0_i32, %c0_i32_0 : i32, i32, i32
  }
}

</mosaic_0001>

<bundles_post_ra>
// kernel: gin_forward.1
= control target key start
LH: loop header
LB: loop body
LE: loop exit
PB: predicated region body
PF: predicated region fallthrough
CT: control target
= control target key end

     0   :  { %s2531_s0 = inlined_call_operand.vmem [shape: s8[4,64,64], index: 0, kind: input, shape index: {}]   ;;  %s2532_s1 = inlined_call_operand.vmem [shape: f32[4,64,128], index: 1, kind: input, shape index: {}]   ;;  %s2533_s2 = inlined_call_operand.vmem [shape: bf16[2,128,128], index: 2, kind: input, shape index: {}]   ;;  %s2534_s3 = inlined_call_operand.vmem [shape: bf16[2,128,128], index: 3, kind: input, shape index: {}]   ;;  %s2535_s4 = inlined_call_operand.vmem [shape: f32[2,8,128], index: 4, kind: input, shape index: {}]   ;;  %s2536_s5 = inlined_call_operand.vmem [shape: f32[2], index: 5, kind: input, shape index: {}]   ;;  %s2537_s6 = inlined_call_operand.vmem [shape: f32[2], index: 6, kind: input, shape index: {}]   ;;  %s2538_s7 = inlined_call_operand.<no memory space> [shape: f32[1], index: 7, kind: input, shape index: {}]   ;;  %s2539_s8 = inlined_call_operand.vmem [shape: f32[4,64,128], index: 8, kind: output, shape index: {}]  }
   0x1   :  { %13 = sst [smem:[#allocation2]] %s2538_s7 }
   0x2   :  { %14 = vsyncpa [#allocation4], 0 }
   0x3   :  { %15 = vsyncpa [#allocation6], 0  ;;  %s2192_s29 = smov 0  }
   0x4 LB: > { %s2198_s30 = sadd.s32 4294967295, %s2140_s29   ;;  %p1738_p0 = scmp.ge.s32.totalorder %s2140_s29, 1  ;;  %s2140_s29 = sphi %s2192_s29, %s21_s29  }
   0x5   : > { %p230_p1 = scmp.lt.s32.totalorder %s2140_s29, 5  ;;  %s252_s10 = sshll.u32 %s2536_s5, 4  ;;  %s253_s10 = int_to_ptr.vmem [resolvable:$true] %s252_s10 }
   0x6   : > { %p2540_p3 = scmp.eq.s32.totalorder %s2198_s30, 0  ;;  %s263_s14 = sshll.u32 %s2537_s6, 4  ;;  %s264_s14 = int_to_ptr.vmem [resolvable:$true] %s263_s14 }
   0x7   : > { %p2205_p2 = pnand %p1738_p0, %p230_p1  ;;  %s2096_s16 = scalar_lea.vmem %s253_s10, 16 }
   0x8   : > { %p2097_p6 = scmp.ne.s32.totalorder %s253_s10, %s2096_s16  ;;  %p2104_p10 = scmp.lt.s32.totalorder %s253_s10, %s253_s10 }
   0x9   : > { %s2542_s11 = scalar_select %p2205_p2, 1, 0 }
   0xa   : > { %p2031_p4 = pneg %p2205_p2  ;;  %p2105_p11 = scmp.lt.s32.totalorder %s2096_s16, %s2096_s16 }
   0xc   : > { %p2217_p5 = pnand %p2540_p3, %p2031_p4  ;;  %p2106_p12 = por %p2105_p11, %p2104_p10 }
   0xe   : > { %p2098_p7 = pneg %p2217_p5 }
  0x10   : > { %p2099_p8 = pnand %p2098_p7, %p2097_p6 }
  0x12   : > { %p2100_p9 = pneg %p2099_p8 }
  0x14   : > { %p2107_p13 = pnand %p2106_p12, %p2100_p9 }
  0x16   : > { %2110 = shalt.err (!%p2107_p13)
}
  0x17   : > { %s2142_s17 = smov [#allocation3]   ;;  %s2111_s18 = scalar_lea.vmem %s264_s14, 16 }
  0x18   : > { %2034 = dma.vmem_to_smem (!%p2217_p5), %s253_s10, 16, %s2142_s17, [#allocation4]  }
  0x19   : > { %p2112_p0 = scmp.ne.s32.totalorder %s264_s14, %s2111_s18  ;;  %p2119_p3 = scmp.lt.s32.totalorder %s264_s14, %s264_s14 }
  0x1a   : > { %p2120_p2 = scmp.lt.s32.totalorder %s2111_s18, %s2111_s18 }
  0x1b   : > { %p2114_p1 = pnand %p2112_p0, %p2098_p7 }
  0x1c   : > { %p2121_p6 = por %p2120_p2, %p2119_p3 }
  0x1d   : > { %p2115_p4 = pneg %p2114_p1 }
  0x1f   : > { %p2122_p8 = pnand %p2121_p6, %p2115_p4 }
  0x21   : > { %2125 = shalt.err (!%p2122_p8)
}
  0x22   : > { %s2143_s19 = smov [#allocation5]   ;;  %p2544_p9 = scmp.ne.s32.totalorder %s2542_s11, 0 }
  0x23   : > { %2037 = dma.vmem_to_smem (!%p2217_p5), %s264_s14, 16, %s2143_s19, [#allocation6]  }
  0x24   : > { %295 = sbr.rel (%p2544_p9) target bundleno = 1774 (0x6ee), region = 52  ;;  %p2545_p10 = scmp.eq.s32.totalorder (!%p2544_p9), %s2198_s30, 0 }
  0x2b   : > { %2131 = dma.done.wait (%p2545_p10), [#allocation4], 16   ;;  %p2546_p11 = pmov %p2545_p10 }
  0x2c   : > { %p2547_p7 = pmov %p2545_p10 }
  0x2d   : > { %2133 = vsyncadd (%p2546_p11), [#allocation4], 4294967280 }
  0x2e   : > { %2135 = dma.done.wait (%p2547_p7), [#allocation6], 16   ;;  %p2548_p2 = pmov %p2547_p7 }
  0x30   : > { %2137 = vsyncadd (%p2548_p2), [#allocation6], 4294967280 }
  0x31   : > { %305 = sfence }
  0x32   : > { %p339_p3 = scmp.lt.s32.totalorder %s2198_s30, 3  ;;  %v2052_v0 = vld [vmem:[%s2533_s2] sm:$0xff]   ;;  %v2053_v1 = vld [vmem:[%s2533_s2 + $0x8] sm:$0xff]   ;;  %v2054_v2 = vld [vmem:[%s2533_s2 + $0x10] sm:$0xff]   ;;  %vm406_vm0 = vcmask 523264   ;;  %s484_s23 = sld [smem:[#allocation3]] }
  0x33   : > { %1911 = vmatprep.subr.bf16.mxu1 %v2052_v0  ;;  %v2055_v13 = vld [vmem:[%s2533_s2 + $0x18] sm:$0xff]   ;;  %v2056_v17 = vld [vmem:[%s2533_s2 + $0x20] sm:$0xff]   ;;  %v2057_v19 = vld [vmem:[%s2533_s2 + $0x28] sm:$0xff]   ;;  %s1808_s19 = sld [smem:[#allocation3 + $0x1]]  ;;  %s1629_s21 = sld [smem:[#allocation2]] }
  0x34   : > { %s2550_s30 = smov (!%p339_p3, %s2198_s30), 3  ;;  %1912 = vmatpush3.bf16.msra.mxu1 %v2052_v0  ;;  %v2058_v24 = vld [vmem:[%s2533_s2 + $0x30] sm:$0xff]   ;;  %v2059_v25 = vld [vmem:[%s2533_s2 + $0x38] sm:$0xff]   ;;  %v2060_v55 = vld [vmem:[%s2534_s3] sm:$0xff]  }
  0x35   : > { %s1829_s24 = sshll.u32 %s2550_s30, 6  ;;  %s1828_s25 = sshll.u32 %s2550_s30, 4  ;;  %1913 = vmatprep.subr.bf16.mxu1 %v2053_v1  ;;  %v2061_v56 = vld [vmem:[%s2534_s3 + $0x8] sm:$0xff]   ;;  %v2062_v57 = vld [vmem:[%s2534_s3 + $0x10] sm:$0xff]   ;;  %v2063_v58 = vld [vmem:[%s2534_s3 + $0x18] sm:$0xff]  }
  0x36   : > { %s348_s7 = scalar_lea.vmem %s2532_s1, %s1829_s24  ;;  %s343_s12 = scalar_lea.vmem %s2531_s0, %s1828_s25  ;;  %v2064_v59 = vld [vmem:[%s2534_s3 + $0x20] sm:$0xff]   ;;  %v2065_v60 = vld [vmem:[%s2534_s3 + $0x28] sm:$0xff]   ;;  %v2066_v61 = vld [vmem:[%s2534_s3 + $0x30] sm:$0xff]  }
  0x37   : > { %v361_v3 = vld [vmem:[%s348_s7] sm:$0xff]  ;;  %v362_v4 = vld [vmem:[%s348_s7 + $0x8] sm:$0xff]  ;;  %v363_v5 = vld [vmem:[%s348_s7 + $0x10] sm:$0xff] }
  0x38   : > { %v402_v6 = vpack.c.bf16 %v362_v4, %v361_v3  ;;  %v364_v7 = vld [vmem:[%s348_s7 + $0x18] sm:$0xff]  ;;  %v2260_v9 = vld [vmem:[%s348_s7 + $0x20] sm:$0xff]  ;;  %v2262_v10 = vld [vmem:[%s348_s7 + $0x28] sm:$0xff]  ;;  %1914 = vmatpush3.bf16.msra.mxu1 %v2053_v1  ;;  %s485_s25 = sadd.f32 1.0, %s484_s23 }
  0x39   : > { %v403_v8 = vpack.c.bf16 %v364_v7, %v363_v5  ;;  %v2264_v11 = vld [vmem:[%s343_s12] sm:$0xff]  ;;  %1915 = vmatprep.subr.bf16.mxu1 %v2054_v2  ;;  %v367_v14 = vld [vmem:[%s348_s7 + $0x30] sm:$0xff]  ;;  %v368_v15 = vld [vmem:[%s348_s7 + $0x38] sm:$0xff]  ;;  %v404_v16 = vpack.c.bf16 %v2262_v10, %v2260_v9  ;;  %s1098_s20 = sadd.f32 1.0, %s1808_s19  ;;  %s974_s19 = sld [smem:[#allocation5]] }
  0x3a   : > { %1895 = vmatprep.subr.bf16.mxu0 %v402_v6  ;;  %v357_v12 = vunpack.c.l.s8.bf16 %v2264_v11  ;;  %v405_v18 = vpack.c.bf16 %v368_v15, %v367_v14  ;;  %v2281_v20 = vld [vmem:[%s343_s12 + $0x8] sm:$0xff]  ;;  %v358_v21 = vunpack.c.h.s8.bf16 %v2264_v11  ;;  %v486_v26 = vstv %s485_s25  ;;  %v2067_v62 = vld [vmem:[%s2534_s3 + $0x38] sm:$0xff]   ;;  %s353_s25 = scalar_lea.vmem %s2539_s8, %s1829_s24 }
  0x3b   : > { %1896 = vmatpush3.bf16.msra.mxu0 %v402_v6  ;;  %v359_v22 = vunpack.c.l.s8.bf16 %v2281_v20  ;;  %v360_v23 = vunpack.c.h.s8.bf16 %v2281_v20  ;;  %v489_v27 = vmul.f32 %v486_v26, %v363_v5  ;;  %v490_v28 = vmul.f32 %v486_v26, %v364_v7  ;;  %v2075_v11 = vld [vmem:[%s2533_s2 + $0x78] sm:$0xff]  }
  0x3c   : > { %1897 = vmatprep.subr.bf16.mxu0 %v403_v8  ;;  %1903 = vmatprep.mubr.msk.bf16.mxu0 %vm406_vm0, %v357_v12  ;;  %v487_v30 = vmul.f32 %v486_v26, %v361_v3  ;;  %v488_v31 = vmul.f32 %v486_v26, %v362_v4  ;;  %v493_v41 = vmul.f32 %v486_v26, %v367_v14 }
  0x3d   : > { %1916 = vmatpush3.bf16.msra.mxu1 %v2054_v2  ;;  %v494_v42 = vmul.f32 %v486_v26, %v368_v15  ;;  %v491_v44 = vmul.f32 %v486_v26, %v2260_v9  ;;  %v492_v45 = vmul.f32 %v486_v26, %v2262_v10 }
  0x3e   : > { %1917 = vmatprep.subr.bf16.mxu1 %v2055_v13 }
  0x3f   : > { %1898 = vmatpush3.bf16.msra.mxu0 %v403_v8 }
  0x40   : > { %1899 = vmatprep.subr.bf16.mxu0 %v404_v16 }
  0x41   : > { %1918 = vmatpush3.bf16.msra.mxu1 %v2055_v13 }
  0x42   : > { %1919 = vmatprep.subr.bf16.mxu1 %v2056_v17 }
  0x43   : > { %1900 = vmatpush3.bf16.msra.mxu0 %v404_v16 }
  0x44   : > { %1901 = vmatprep.subr.bf16.mxu0 %v405_v18 }
  0x45   : > { %1920 = vmatpush3.bf16.msra.mxu1 %v2056_v17 }
  0x46   : > { %1921 = vmatprep.subr.bf16.mxu1 %v2057_v19 }
  0x47   : > { %1902 = vmatpush3.bf16.msra.mxu0 %v405_v18 }
  0x48   : > { %1935 = vmatprep.subr.bf16.mxu0 %v2060_v55 }
  0x49   : > { %1922 = vmatpush3.bf16.msra.mxu1 %v2057_v19 }
  0x4a   : > { %1904 = vmatmul.mubr.msk.bf16.vlgmr.msra.gmra.mrb[0].mxu0 %vm406_vm0, %v358_v21  ;;  %1923 = vmatprep.subr.bf16.mxu1 %v2058_v24 }
  0x4b   : > { %1907 = vmatprep.mubr.msk.bf16.mxu0 %vm406_vm0, %v359_v22  ;;  %1936 = vmatpush3.bf16.msra.mxu0 %v2060_v55 }
  0x4c   : > { %1937 = vmatprep.subr.bf16.mxu0 %v2061_v56 }
  0x4d   : > { %1924 = vmatpush3.bf16.msra.mxu1 %v2058_v24 }
  0x4e   : > { %1925 = vmatprep.subr.bf16.mxu1 %v2059_v25 }
  0x4f   : > { %1938 = vmatpush3.bf16.msra.mxu0 %v2061_v56 }
  0x50   : > { %1939 = vmatprep.subr.bf16.mxu0 %v2062_v57 }
  0x51   : > { %1926 = vmatpush3.bf16.msra.mxu1 %v2059_v25 }
  0x52   : > { %1908 = vmatmul.mubr.msk.bf16.gmra.mrb[4].mxu0 %vm406_vm0, %v360_v23 }
  0x53   : > { %1940 = vmatpush3.bf16.msra.mxu0 %v2062_v57 }
  0x54   : > { %1941 = vmatprep.subr.bf16.mxu0 %v2063_v58 }
  0x57   : > { %1942 = vmatpush3.bf16.msra.mxu0 %v2063_v58 }
  0x58   : > { %1943 = vmatprep.subr.bf16.mxu0 %v2064_v59 }
  0x5b   : > { %1944 = vmatpush3.bf16.msra.mxu0 %v2064_v59 }
  0x5c   : > { %1945 = vmatprep.subr.bf16.mxu0 %v2065_v60 }
  0x5f   : > { %1946 = vmatpush3.bf16.msra.mxu0 %v2065_v60 }
  0x60   : > { %1947 = vmatprep.subr.bf16.mxu0 %v2066_v61 }
  0x63   : > { %1948 = vmatpush3.bf16.msra.mxu0 %v2066_v61 }
  0x64   : > { %1949 = vmatprep.subr.bf16.mxu0 %v2067_v62 }
  0x67   : > { %1950 = vmatpush3.bf16.msra.mxu0 %v2067_v62 }
 0x11d   : > { %v1905_v29 = vpop.f32.mrb[0].mxu0 }
 0x11e   : > { %v453_v32 = vpop.f32.mrb[1].mxu0  ;;  %v497_v34 = vadd.f32 %v1905_v29, %v489_v27 }
 0x11f   : > { %v1906_v33 = vpop.f32.mrb[2].mxu0  ;;  %v495_v37 = vadd.f32 %v487_v30, %v453_v32 }
 0x120   : > { %v498_v35 = vadd.f32 %v1906_v33, %v490_v28  ;;  %v456_v36 = vpop.f32.mrb[3].mxu0 }
 0x121   : > { %v496_v38 = vadd.f32 %v488_v31, %v456_v36 }
 0x122   : > { %v504_v39 = vpack.c.bf16 %v498_v35, %v497_v34 }
 0x123   : > { %v503_v40 = vpack.c.bf16 %v496_v38, %v495_v37 }
 0x125   : > { %v1909_v43 = vpop.f32.mrb[4].mxu0  ;;  %1927 = vmatprep.mubr.bf16.mxu1 %v503_v40 }
 0x126   : > { %v469_v46 = vpop.f32.mrb[5].mxu0  ;;  %1928 = vmatmul.mubr.bf16.vlgmr.msra.gmra.mrb[0].mxu1 %v504_v39  ;;  %v501_v48 = vadd.f32 %v1909_v43, %v493_v41 }
 0x127   : > { %v1910_v47 = vpop.f32.mrb[6].mxu0  ;;  %v499_v51 = vadd.f32 %v491_v44, %v469_v46 }
 0x128   : > { %v502_v49 = vadd.f32 %v1910_v47, %v494_v42  ;;  %v472_v50 = vpop.f32.mrb[7].mxu0 }
 0x129   : > { %v500_v52 = vadd.f32 %v492_v45, %v472_v50 }
 0x12a   : > { %v506_v53 = vpack.c.bf16 %v502_v49, %v501_v48 }
 0x12b   : > { %v505_v54 = vpack.c.bf16 %v500_v52, %v499_v51  ;;  %v667_v52 = vlaneseq }
 0x12d   : > { %1931 = vmatprep.mubr.bf16.mxu1 %v505_v54  ;;  %v2335_v54 = vld [vmem:[%s2535_s4] sm:$0xff] }
 0x12e   : > { %1932 = vmatmul.mubr.bf16.gmra.mrb[4].mxu1 %v506_v53  ;;  %v2330_v53 = vshrl.u32 %v667_v52, 7 }
 0x12f   : > { %1967 = vmatprep.mubr.msk.bf16.mxu1 %vm406_vm0, %v357_v12 }
 0x130   : > { %v669_v55 = vsub.s32 0, %v2330_v53  ;;  %v681_v60 = vsub.s32 1, %v2330_v53 }
 0x1f9   : > { %v1929_v63 = vpop.f32.mrb[0].mxu1 }
 0x1fa   : > { %v589_v0 = vpop.f32.mrb[1].mxu1  ;;  %v635_v6 = vmul.f32 %v1929_v63, %v1929_v63 }
 0x1fb   : > { %v1930_v1 = vpop.f32.mrb[2].mxu1  ;;  %v633_v3 = vmul.f32 %v589_v0, %v589_v0 }
 0x1fc   : > { %v592_v2 = vpop.f32.mrb[3].mxu1  ;;  %v636_v9 = vmul.f32 %v1930_v1, %v1930_v1 }
 0x1fd   : > { %v620_v4 = vadd.f32 %v592_v2, %v589_v0  ;;  %v634_v5 = vmul.f32 %v592_v2, %v592_v2 }
 0x1ff   : > { %v621_v7 = vadd.f32 %v1929_v63, %v620_v4  ;;  %v641_v8 = vadd.f32 %v634_v5, %v633_v3 }
 0x201   : > { %v642_v10 = vadd.f32 %v641_v8, %v635_v6  ;;  %v1933_v12 = vpop.f32.mrb[4].mxu1  ;;  %v622_v13 = vadd.f32 %v1930_v1, %v621_v7 }
 0x202   : > { %v605_v14 = vpop.f32.mrb[5].mxu1  ;;  %v639_v27 = vmul.f32 %v1933_v12, %v1933_v12 }
 0x203   : > { %v623_v15 = vadd.f32 %v622_v13, %v605_v14  ;;  %v637_v16 = vmul.f32 %v605_v14, %v605_v14  ;;  %v643_v17 = vadd.f32 %v642_v10, %v636_v9  ;;  %v1934_v18 = vpop.f32.mrb[6].mxu1 }
 0x204   : > { %v608_v19 = vpop.f32.mrb[7].mxu1  ;;  %v640_v30 = vmul.f32 %v1934_v18, %v1934_v18 }
 0x205   : > { %v644_v24 = vadd.f32 %v643_v17, %v637_v16  ;;  %v624_v25 = vadd.f32 %v623_v15, %v608_v19  ;;  %v638_v26 = vmul.f32 %v608_v19, %v608_v19 }
 0x207   : > { %v625_v28 = vadd.f32 %v1933_v12, %v624_v25  ;;  %v645_v29 = vadd.f32 %v644_v24, %v638_v26 }
 0x209   : > { %v626_v31 = vadd.f32 %v1934_v18, %v625_v28  ;;  %v646_v32 = vadd.f32 %v645_v29, %v639_v27 }
 0x20b   : > { %v627_v33 = vrot.slane %v626_v31, 4  ;;  %v647_v34 = vadd.f32 %v646_v32, %v640_v30 }
 0x20d   : > { %v628_v35 = vadd.f32 %v627_v33, %v626_v31  ;;  %v648_v36 = vrot.slane %v647_v34, 4 }
 0x20f   : > { %v629_v37 = vrot.slane %v628_v35, 2  ;;  %v649_v38 = vadd.f32 %v648_v36, %v647_v34 }
 0x211   : > { %v630_v39 = vadd.f32 %v629_v37, %v628_v35  ;;  %v650_v40 = vrot.slane %v649_v38, 2 }
 0x213   : > { %v631_v41 = vrot.slane %v630_v39, 1  ;;  %v651_v42 = vadd.f32 %v650_v40, %v649_v38 }
 0x215   : > { %v632_v43 = vadd.f32 %v631_v41, %v630_v39  ;;  %v652_v44 = vrot.slane %v651_v42, 1 }
 0x217   : > { %v653_v45 = vadd.f32 %v652_v44, %v651_v42  ;;  %v654_v46 = vmul.f32 0.015625, %v632_v43 }
 0x219   : > { %v655_v47 = vmul.f32 0.015625, %v653_v45  ;;  %v656_v48 = vmul.f32 %v654_v46, %v654_v46 }
 0x21b   : > { %v657_v49 = vsub.f32 %v655_v47, %v656_v48 }
 0x21d   : > { %v658_v50 = vmax.f32 %v657_v49, 0.0 }
 0x21f   : > { %v659_v51 = vadd.f32 1e-05, %v658_v50 }
 0x221   : > { %2084 = vrsqrt.f32 %v659_v51 }
 0x22b   : > { %v2085_v56 = vpop.eup %2084 }
 0x22c   : > { %v661_v57 = vmul.f32 %v2085_v56, %v2335_v54 }
 0x22e   : > { %v662_v58 = vmul.f32 %v661_v57, %v654_v46  ;;  %v670_v59 = vrot.slane %v661_v57, %v669_v55 }
 0x230   : > { %v664_v61 = vrot.slane %v662_v58, 7  ;;  %v676_v62 = vmul.f32 %v670_v59, %v608_v19  ;;  %v671_v3 = vmul.f32 %v670_v59, %v589_v0  ;;  %v672_v4 = vmul.f32 %v670_v59, %v592_v2 }
 0x231   : > { %v673_v5 = vmul.f32 %v1929_v63, %v670_v59  ;;  %v674_v6 = vmul.f32 %v1930_v1, %v670_v59  ;;  %v675_v7 = vmul.f32 %v670_v59, %v605_v14  ;;  %v677_v8 = vmul.f32 %v1933_v12, %v670_v59 }
 0x232   : > { %v666_v9 = vsub.f32 %v2335_v54, %v664_v61  ;;  %v678_v10 = vmul.f32 %v1934_v18, %v670_v59 }
 0x234   : > { %v682_v13 = vrot.slane %v666_v9, %v681_v60 }
 0x236   : > { %v688_v15 = vadd.f32 %v682_v13, %v676_v62  ;;  %v683_v16 = vadd.f32 %v682_v13, %v671_v3  ;;  %v684_v17 = vadd.f32 %v682_v13, %v672_v4  ;;  %v685_v24 = vadd.f32 %v682_v13, %v673_v5 }
 0x237   : > { %v686_v25 = vadd.f32 %v682_v13, %v674_v6  ;;  %v687_v26 = vadd.f32 %v682_v13, %v675_v7  ;;  %v689_v27 = vadd.f32 %v682_v13, %v677_v8  ;;  %v690_v19 = vadd.f32 %v682_v13, %v678_v10 }
 0x238   : > { %v691_v0 = vmax.f32 %v683_v16, 0.0  ;;  %v692_v2 = vmax.f32 %v684_v17, 0.0  ;;  %v693_v63 = vmax.f32 %v685_v24, 0.0  ;;  %v696_v1 = vmax.f32 %v688_v15, 0.0  ;;  %v2068_v17 = vld [vmem:[%s2533_s2 + $0x40] sm:$0xff]   ;;  %v2069_v24 = vld [vmem:[%s2533_s2 + $0x48] sm:$0xff]  }
 0x239   : > { %v694_v14 = vmax.f32 %v686_v25, 0.0  ;;  %v695_v12 = vmax.f32 %v687_v26, 0.0  ;;  %v697_v28 = vmax.f32 %v689_v27, 0.0  ;;  %v698_v29 = vmax.f32 %v690_v19, 0.0  ;;  %1975 = vmatprep.subr.bf16.mxu0 %v2068_v17 }
 0x23a   : > { %v699_v18 = vpack.c.bf16 %v692_v2, %v691_v0  ;;  %v2070_v0 = vld [vmem:[%s2533_s2 + $0x50] sm:$0xff]  }
 0x23b   : > { %v700_v30 = vpack.c.bf16 %v694_v14, %v693_v63  ;;  %v701_v31 = vpack.c.bf16 %v696_v1, %v695_v12  ;;  %v702_v32 = vpack.c.bf16 %v698_v29, %v697_v28  ;;  %v2071_v12 = vld [vmem:[%s2533_s2 + $0x58] sm:$0xff]  }
 0x23c   : > { %1951 = vmatprep.mubr.bf16.mxu0 %v699_v18  ;;  %v2072_v18 = vld [vmem:[%s2533_s2 + $0x60] sm:$0xff]  }
 0x23d   : > { %1952 = vmatmul.mubr.bf16.vlgmr.msra.gmra.mrb[8].mxu0 %v700_v30 }
 0x23e   : > { %1955 = vmatprep.mubr.bf16.mxu0 %v701_v31  ;;  %1976 = vmatpush3.bf16.msra.mxu0 %v2068_v17  ;;  %v2073_v31 = vld [vmem:[%s2533_s2 + $0x68] sm:$0xff]  }
 0x23f   : > { %1977 = vmatprep.subr.bf16.mxu0 %v2069_v24 }
 0x242   : > { %1978 = vmatpush3.bf16.msra.mxu0 %v2069_v24 }
 0x243   : > { %1979 = vmatprep.subr.bf16.mxu0 %v2070_v0 }
 0x245   : > { %1956 = vmatmul.mubr.bf16.gmra.mrb[12].mxu0 %v702_v32  ;;  %v865_v32 = vsub.s32 2, %v2330_v53 }
 0x246   : > { %1980 = vmatpush3.bf16.msra.mxu0 %v2070_v0 }
 0x247   : > { %1981 = vmatprep.subr.bf16.mxu0 %v2071_v12 }
 0x24a   : > { %1982 = vmatpush3.bf16.msra.mxu0 %v2071_v12 }
 0x24b   : > { %1983 = vmatprep.subr.bf16.mxu0 %v2072_v18 }
 0x24e   : > { %1984 = vmatpush3.bf16.msra.mxu0 %v2072_v18 }
 0x24f   : > { %1985 = vmatprep.subr.bf16.mxu0 %v2073_v31 }
 0x252   : > { %1986 = vmatpush3.bf16.msra.mxu0 %v2073_v31 }
 0x310   : > { %v2345_v33 = vpop.f32.mrb[8].mxu0 }
 0x311   : > { %v2347_v34 = vpop.f32.mrb[9].mxu0  ;;  %v831_v40 = vmul.f32 %v2345_v33, %v2345_v33 }
 0x312   : > { %v2349_v35 = vpop.f32.mrb[10].mxu0  ;;  %v829_v37 = vmul.f32 %v2347_v34, %v2347_v34 }
 0x313   : > { %v2351_v36 = vpop.f32.mrb[11].mxu0  ;;  %v832_v43 = vmul.f32 %v2349_v35, %v2349_v35 }
 0x314   : > { %v816_v38 = vadd.f32 %v2351_v36, %v2347_v34  ;;  %v830_v39 = vmul.f32 %v2351_v36, %v2351_v36 }
 0x316   : > { %v817_v41 = vadd.f32 %v2345_v33, %v816_v38  ;;  %v837_v42 = vadd.f32 %v830_v39, %v829_v37 }
 0x318   : > { %v838_v44 = vadd.f32 %v837_v42, %v831_v40  ;;  %v2364_v45 = vpop.f32.mrb[12].mxu0  ;;  %v818_v46 = vadd.f32 %v2349_v35, %v817_v41  ;;  %v877_v41 = vsub.s32 3, %v2330_v53 }
 0x319   : > { %v2367_v47 = vpop.f32.mrb[13].mxu0  ;;  %v835_v59 = vmul.f32 %v2364_v45, %v2364_v45 }
 0x31a   : > { %v819_v48 = vadd.f32 %v818_v46, %v2367_v47  ;;  %v833_v49 = vmul.f32 %v2367_v47, %v2367_v47  ;;  %v839_v50 = vadd.f32 %v838_v44, %v832_v43  ;;  %v2372_v51 = vpop.f32.mrb[14].mxu0 }
 0x31b   : > { %v804_v52 = vpop.f32.mrb[15].mxu0  ;;  %v836_v3 = vmul.f32 %v2372_v51, %v2372_v51 }
 0x31c   : > { %v840_v56 = vadd.f32 %v839_v50, %v833_v49  ;;  %v820_v57 = vadd.f32 %v819_v48, %v804_v52  ;;  %v834_v58 = vmul.f32 %v804_v52, %v804_v52 }
 0x31e   : > { %v821_v61 = vadd.f32 %v2364_v45, %v820_v57  ;;  %v841_v62 = vadd.f32 %v840_v56, %v834_v58 }
 0x320   : > { %v822_v4 = vadd.f32 %v2372_v51, %v821_v61  ;;  %v842_v5 = vadd.f32 %v841_v62, %v835_v59 }
 0x322   : > { %v823_v6 = vrot.slane %v822_v4, 4  ;;  %v843_v7 = vadd.f32 %v842_v5, %v836_v3 }
 0x324   : > { %v824_v8 = vadd.f32 %v823_v6, %v822_v4  ;;  %v844_v9 = vrot.slane %v843_v7, 4 }
 0x326   : > { %v825_v10 = vrot.slane %v824_v8, 2  ;;  %v845_v13 = vadd.f32 %v844_v9, %v843_v7 }
 0x328   : > { %v826_v15 = vadd.f32 %v825_v10, %v824_v8  ;;  %v846_v16 = vrot.slane %v845_v13, 2 }
 0x32a   : > { %v827_v25 = vrot.slane %v826_v15, 1  ;;  %v847_v26 = vadd.f32 %v846_v16, %v845_v13 }
 0x32c   : > { %v828_v27 = vadd.f32 %v827_v25, %v826_v15  ;;  %v848_v19 = vrot.slane %v847_v26, 1 }
 0x32e   : > { %v849_v2 = vadd.f32 %v848_v19, %v847_v26  ;;  %v850_v63 = vmul.f32 0.015625, %v828_v27 }
 0x330   : > { %v851_v1 = vmul.f32 0.015625, %v849_v2  ;;  %v852_v14 = vmul.f32 %v850_v63, %v850_v63 }
 0x332   : > { %v853_v28 = vsub.f32 %v851_v1, %v852_v14 }
 0x334   : > { %v854_v29 = vmax.f32 %v853_v28, 0.0 }
 0x336   : > { %v855_v30 = vadd.f32 1e-05, %v854_v29 }
 0x338   : > { %2086 = vrsqrt.f32 %v855_v30 }
 0x342   : > { %v2087_v37 = vpop.eup %2086 }
 0x343   : > { %v857_v38 = vmul.f32 %v2087_v37, %v2335_v54 }
 0x345   : > { %v858_v39 = vmul.f32 %v857_v38, %v850_v63  ;;  %v866_v40 = vrot.slane %v857_v38, %v865_v32 }
 0x347   : > { %v860_v42 = vrot.slane %v858_v39, 7  ;;  %v867_v43 = vmul.f32 %v866_v40, %v2347_v34  ;;  %v868_v44 = vmul.f32 %v866_v40, %v2351_v36  ;;  %v869_v46 = vmul.f32 %v2345_v33, %v866_v40 }
 0x348   : > { %v870_v48 = vmul.f32 %v2349_v35, %v866_v40  ;;  %v871_v49 = vmul.f32 %v866_v40, %v2367_v47  ;;  %v872_v50 = vmul.f32 %v866_v40, %v804_v52  ;;  %v873_v56 = vmul.f32 %v2364_v45, %v866_v40 }
 0x349   : > { %v862_v57 = vsub.f32 %v2335_v54, %v860_v42  ;;  %v874_v58 = vmul.f32 %v2372_v51, %v866_v40 }
 0x34b   : > { %v878_v59 = vrot.slane %v862_v57, %v877_v41 }
 0x34d   : > { %v879_v61 = vadd.f32 %v878_v59, %v867_v43  ;;  %v880_v34 = vadd.f32 %v878_v59, %v868_v44  ;;  %v881_v62 = vadd.f32 %v878_v59, %v869_v46  ;;  %v882_v36 = vadd.f32 %v878_v59, %v870_v48 }
 0x34e   : > { %v883_v3 = vadd.f32 %v878_v59, %v871_v49  ;;  %v884_v33 = vadd.f32 %v878_v59, %v872_v50  ;;  %v885_v4 = vadd.f32 %v878_v59, %v873_v56  ;;  %v886_v35 = vadd.f32 %v878_v59, %v874_v58 }
 0x34f   : > { %v887_v5 = vmax.f32 %v879_v61, 0.0  ;;  %v888_v47 = vmax.f32 %v880_v34, 0.0  ;;  %v889_v52 = vmax.f32 %v881_v62, 0.0  ;;  %v890_v6 = vmax.f32 %v882_v36, 0.0 }
 0x350   : > { %v891_v9 = vmax.f32 %v883_v3, 0.0  ;;  %v892_v15 = vmax.f32 %v884_v33, 0.0  ;;  %v893_v25 = vmax.f32 %v885_v4, 0.0  ;;  %v894_v0 = vmax.f32 %v886_v35, 0.0 }
 0x351   : > { %v895_v45 = vadd.f32 %v888_v47, %v887_v5  ;;  %v908_v7 = vmul.f32 %v887_v5, %v887_v5  ;;  %v909_v8 = vmul.f32 %v888_v47, %v888_v47  ;;  %v910_v10 = vmul.f32 %v889_v52, %v889_v52 }
 0x352   : > { %v911_v17 = vmul.f32 %v890_v6, %v890_v6  ;;  %v912_v27 = vmul.f32 %v891_v9, %v891_v9  ;;  %v913_v63 = vmul.f32 %v892_v15, %v892_v15  ;;  %v914_v12 = vmul.f32 %v893_v25, %v893_v25 }
 0x353   : > { %v896_v51 = vadd.f32 %v895_v45, %v889_v52  ;;  %v916_v13 = vadd.f32 %v909_v8, %v908_v7  ;;  %v915_v18 = vmul.f32 %v894_v0, %v894_v0  ;;  %v944_v36 = vsub.s32 4, %v2330_v53 }
 0x354   : > { %v956_v45 = vsub.s32 5, %v2330_v53 }
 0x355   : > { %v897_v16 = vadd.f32 %v896_v51, %v890_v6  ;;  %v917_v24 = vadd.f32 %v916_v13, %v910_v10 }
 0x357   : > { %v898_v26 = vadd.f32 %v897_v16, %v891_v9  ;;  %v918_v19 = vadd.f32 %v917_v24, %v911_v17 }
 0x359   : > { %v899_v2 = vadd.f32 %v898_v26, %v892_v15  ;;  %v919_v1 = vadd.f32 %v918_v19, %v912_v27 }
 0x35b   : > { %v900_v14 = vadd.f32 %v899_v2, %v893_v25  ;;  %v920_v28 = vadd.f32 %v919_v1, %v913_v63 }
 0x35d   : > { %v901_v29 = vadd.f32 %v900_v14, %v894_v0  ;;  %v921_v30 = vadd.f32 %v920_v28, %v914_v12 }
 0x35f   : > { %v902_v31 = vrot.slane %v901_v29, 4  ;;  %v922_v37 = vadd.f32 %v921_v30, %v915_v18 }
 0x361   : > { %v903_v38 = vadd.f32 %v902_v31, %v901_v29  ;;  %v923_v39 = vrot.slane %v922_v37, 4 }
 0x363   : > { %v904_v40 = vrot.slane %v903_v38, 2  ;;  %v924_v42 = vadd.f32 %v923_v39, %v922_v37 }
 0x365   : > { %v905_v43 = vadd.f32 %v904_v40, %v903_v38  ;;  %v925_v44 = vrot.slane %v924_v42, 2  ;;  %v2074_v38 = vld [vmem:[%s2533_s2 + $0x70] sm:$0xff]  }
 0x366   : > { %1987 = vmatprep.subr.bf16.mxu0 %v2074_v38 }
 0x367   : > { %v906_v46 = vrot.slane %v905_v43, 1  ;;  %v926_v48 = vadd.f32 %v925_v44, %v924_v42  ;;  %1988 = vmatpush3.bf16.msra.mxu0 %v2074_v38 }
 0x368   : > { %1989 = vmatprep.subr.bf16.mxu0 %v2075_v11 }
 0x369   : > { %v907_v49 = vadd.f32 %v906_v46, %v905_v43  ;;  %v927_v50 = vrot.slane %v926_v48, 1 }
 0x36b   : > { %v928_v56 = vadd.f32 %v927_v50, %v926_v48  ;;  %v929_v57 = vmul.f32 0.015625, %v907_v49  ;;  %1990 = vmatpush3.bf16.msra.mxu0 %v2075_v11 }
 0x36d   : > { %v930_v58 = vmul.f32 0.015625, %v928_v56  ;;  %v931_v59 = vmul.f32 %v929_v57, %v929_v57 }
 0x36f   : > { %v932_v61 = vsub.f32 %v930_v58, %v931_v59 }
 0x371   : > { %v933_v34 = vmax.f32 %v932_v61, 0.0 }
 0x373   : > { %v934_v62 = vadd.f32 1e-05, %v933_v34 }
 0x375   : > { %2088 = vrsqrt.f32 %v934_v62 }
 0x37f   : > { %v2089_v3 = vpop.eup %2088 }
 0x380   : > { %v936_v33 = vmul.f32 %v2089_v3, %v2335_v54 }
 0x382   : > { %v937_v4 = vmul.f32 %v936_v33, %v929_v57  ;;  %v945_v35 = vrot.slane %v936_v33, %v944_v36 }
 0x384   : > { %v939_v7 = vrot.slane %v937_v4, 7  ;;  %v951_v8 = vmul.f32 %v945_v35, %v892_v15  ;;  %v946_v51 = vmul.f32 %v945_v35, %v887_v5  ;;  %v947_v10 = vmul.f32 %v945_v35, %v888_v47 }
 0x385   : > { %v948_v13 = vmul.f32 %v945_v35, %v889_v52  ;;  %v949_v16 = vmul.f32 %v945_v35, %v890_v6  ;;  %v950_v17 = vmul.f32 %v945_v35, %v891_v9  ;;  %v952_v24 = vmul.f32 %v945_v35, %v893_v25 }
 0x386   : > { %v941_v26 = vsub.f32 %v2335_v54, %v939_v7  ;;  %v953_v27 = vmul.f32 %v945_v35, %v894_v0 }
 0x388   : > { %v957_v19 = vrot.slane %v941_v26, %v956_v45  ;;  %v2079_v26 = vld [vmem:[%s2534_s3 + $0x58] sm:$0xff]  }
 0x38a   : > { %v958_v2 = vadd.f32 %v957_v19, %v946_v51  ;;  %v959_v63 = vadd.f32 %v957_v19, %v947_v10  ;;  %v960_v1 = vadd.f32 %v957_v19, %v948_v13  ;;  %v961_v14 = vadd.f32 %v957_v19, %v949_v16  ;;  %v2076_v16 = vld [vmem:[%s2534_s3 + $0x40] sm:$0xff]  }
 0x38b   : > { %v962_v12 = vadd.f32 %v957_v19, %v950_v17  ;;  %v963_v28 = vadd.f32 %v957_v19, %v951_v8  ;;  %v964_v29 = vadd.f32 %v957_v19, %v952_v24  ;;  %v965_v15 = vadd.f32 %v957_v19, %v953_v27  ;;  %v2077_v17 = vld [vmem:[%s2534_s3 + $0x48] sm:$0xff]   ;;  %v2078_v24 = vld [vmem:[%s2534_s3 + $0x50] sm:$0xff]   ;;  %v2080_v27 = vld [vmem:[%s2534_s3 + $0x60] sm:$0xff]  }
 0x38c   : > { %v2421_v5 = vmax.f32 %v958_v2, 0.0  ;;  %v2423_v47 = vmax.f32 %v959_v63, 0.0  ;;  %v2425_v52 = vmax.f32 %v960_v1, 0.0  ;;  %v2427_v6 = vmax.f32 %v961_v14, 0.0  ;;  %v2081_v19 = vld [vmem:[%s2534_s3 + $0x68] sm:$0xff]   ;;  %v2082_v2 = vld [vmem:[%s2534_s3 + $0x70] sm:$0xff]  }
 0x38d   : > { %v2429_v54 = vmax.f32 %v962_v12, 0.0  ;;  %v2431_v9 = vmax.f32 %v963_v28, 0.0  ;;  %v2433_v25 = vmax.f32 %v964_v29, 0.0  ;;  %v2435_v0 = vmax.f32 %v965_v15, 0.0  ;;  %v2083_v63 = vld [vmem:[%s2534_s3 + $0x78] sm:$0xff]  }
 0x38e   : > { %v1028_v18 = vpack.c.bf16 %v2423_v47, %v2421_v5  ;;  %v1029_v30 = vpack.c.bf16 %v2427_v6, %v2425_v52 }
 0x38f   : > { %v1030_v31 = vpack.c.bf16 %v2431_v9, %v2429_v54  ;;  %v1031_v37 = vpack.c.bf16 %v2435_v0, %v2433_v25 }
 0x390   : > { %1959 = vmatprep.subr.bf16.mxu1 %v1028_v18 }
 0x391   : > { %1960 = vmatpush3.bf16.msra.mxu1 %v1028_v18 }
 0x392   : > { %1961 = vmatprep.subr.bf16.mxu1 %v1029_v30 }
 0x395   : > { %1962 = vmatpush3.bf16.msra.mxu1 %v1029_v30 }
 0x396   : > { %1963 = vmatprep.subr.bf16.mxu1 %v1030_v31 }
 0x399   : > { %1964 = vmatpush3.bf16.msra.mxu1 %v1030_v31 }
 0x39a   : > { %1965 = vmatprep.subr.bf16.mxu1 %v1031_v37 }
 0x39d   : > { %1966 = vmatpush3.bf16.msra.mxu1 %v1031_v37 }
 0x39e   : > { %1999 = vmatprep.subr.bf16.mxu1 %v2076_v16 }
 0x3a0   : > { %1968 = vmatmul.mubr.msk.bf16.vlgmr.msra.gmra.mrb[8].mxu1 %vm406_vm0, %v358_v21  ;;  %v1099_v21 = vstv %s1098_s20  ;;  %s1825_s20 = sld [smem:[#allocation5 + $0x1]] }
 0x3a1   : > { %1971 = vmatprep.mubr.msk.bf16.mxu1 %vm406_vm0, %v359_v22  ;;  %v1102_v22 = vmul.f32 %v1099_v21, %v2425_v52  ;;  %v1103_v42 = vmul.f32 %v1099_v21, %v2427_v6  ;;  %v1101_v46 = vmul.f32 %v1099_v21, %v2423_v47  ;;  %v1106_v58 = vmul.f32 %v1099_v21, %v2433_v25 }
 0x3a2   : > { %v1104_v61 = vmul.f32 %v1099_v21, %v2429_v54  ;;  %v1107_v3 = vmul.f32 %v1099_v21, %v2435_v0  ;;  %v1105_v35 = vmul.f32 %v1099_v21, %v2431_v9  ;;  %2000 = vmatpush3.bf16.msra.mxu1 %v2076_v16 }
 0x3a3   : > { %2001 = vmatprep.subr.bf16.mxu1 %v2077_v17 }
 0x3a6   : > { %2002 = vmatpush3.bf16.msra.mxu1 %v2077_v17 }
 0x3a7   : > { %2003 = vmatprep.subr.bf16.mxu1 %v2078_v24 }
 0x3a8   : > { %1972 = vmatmul.mubr.msk.bf16.gmra.mrb[12].mxu1 %vm406_vm0, %v360_v23  ;;  %v1100_v23 = vmul.f32 %v1099_v21, %v2421_v5 }
 0x3aa   : > { %2004 = vmatpush3.bf16.msra.mxu1 %v2078_v24 }
 0x3ab   : > { %2005 = vmatprep.subr.bf16.mxu1 %v2079_v26 }
 0x3ae   : > { %2006 = vmatpush3.bf16.msra.mxu1 %v2079_v26 }
 0x3af   : > { %2007 = vmatprep.subr.bf16.mxu1 %v2080_v27 }
 0x3b2   : > { %2008 = vmatpush3.bf16.msra.mxu1 %v2080_v27 }
 0x3b3   : > { %2009 = vmatprep.subr.bf16.mxu1 %v2081_v19 }
 0x3b6   : > { %2010 = vmatpush3.bf16.msra.mxu1 %v2081_v19 }
 0x3b7   : > { %2011 = vmatprep.subr.bf16.mxu1 %v2082_v2 }
 0x3ba   : > { %2012 = vmatpush3.bf16.msra.mxu1 %v2082_v2 }
 0x3bb   : > { %2013 = vmatprep.subr.bf16.mxu1 %v2083_v63 }
 0x3be   : > { %2014 = vmatpush3.bf16.msra.mxu1 %v2083_v63  ;;  %v2495_v63 = vld [vmem:[%s2535_s4 + $0x8] sm:$0xff] }
 0x473   : > { %v1969_v20 = vpop.f32.mrb[8].mxu1 }
 0x474   : > { %v1110_v39 = vadd.f32 %v1969_v20, %v1102_v22  ;;  %v1066_v40 = vpop.f32.mrb[9].mxu1 }
 0x475   : > { %v1108_v43 = vadd.f32 %v1100_v23, %v1066_v40  ;;  %v1970_v44 = vpop.f32.mrb[10].mxu1 }
 0x476   : > { %v1111_v48 = vadd.f32 %v1970_v44, %v1103_v42  ;;  %v1069_v49 = vpop.f32.mrb[11].mxu1 }
 0x477   : > { %v1109_v50 = vadd.f32 %v1101_v46, %v1069_v49 }
 0x478   : > { %v1117_v56 = vpack.c.bf16 %v1111_v48, %v1110_v39 }
 0x479   : > { %v1116_v57 = vpack.c.bf16 %v1109_v50, %v1108_v43 }
 0x47b   : > { %v1973_v59 = vpop.f32.mrb[12].mxu1  ;;  %1991 = vmatprep.mubr.bf16.mxu0 %v1116_v57 }
 0x47c   : > { %v1114_v34 = vadd.f32 %v1973_v59, %v1106_v58  ;;  %v1082_v62 = vpop.f32.mrb[13].mxu1  ;;  %1992 = vmatmul.mubr.bf16.vlgmr.msra.gmra.mrb[16].mxu0 %v1117_v56 }
 0x47d   : > { %v1112_v33 = vadd.f32 %v1104_v61, %v1082_v62  ;;  %v1974_v4 = vpop.f32.mrb[14].mxu1 }
 0x47e   : > { %v1115_v7 = vadd.f32 %v1974_v4, %v1107_v3  ;;  %v1085_v8 = vpop.f32.mrb[15].mxu1 }
 0x47f   : > { %v1113_v51 = vadd.f32 %v1105_v35, %v1085_v8 }
 0x480   : > { %v1119_v10 = vpack.c.bf16 %v1115_v7, %v1114_v34 }
 0x481   : > { %v1118_v13 = vpack.c.bf16 %v1113_v51, %v1112_v33 }
 0x483   : > { %1995 = vmatprep.mubr.bf16.mxu0 %v1118_v13 }
 0x484   : > { %1996 = vmatmul.mubr.bf16.gmra.mrb[20].mxu0 %v1119_v10 }
 0x54f   : > { %v1993_v1 = vpop.f32.mrb[16].mxu0 }
 0x550   : > { %v1202_v14 = vpop.f32.mrb[17].mxu0  ;;  %v1248_v30 = vmul.f32 %v1993_v1, %v1993_v1 }
 0x551   : > { %v1994_v12 = vpop.f32.mrb[18].mxu0  ;;  %v1246_v29 = vmul.f32 %v1202_v14, %v1202_v14 }
 0x552   : > { %v1205_v28 = vpop.f32.mrb[19].mxu0  ;;  %v1249_v38 = vmul.f32 %v1994_v12, %v1994_v12 }
 0x553   : > { %v1233_v15 = vadd.f32 %v1205_v28, %v1202_v14  ;;  %v1247_v18 = vmul.f32 %v1205_v28, %v1205_v28 }
 0x555   : > { %v1234_v31 = vadd.f32 %v1993_v1, %v1233_v15  ;;  %v1254_v37 = vadd.f32 %v1247_v18, %v1246_v29 }
 0x557   : > { %v1255_v11 = vadd.f32 %v1254_v37, %v1248_v30  ;;  %v1997_v21 = vpop.f32.mrb[20].mxu0  ;;  %v1235_v22 = vadd.f32 %v1994_v12, %v1234_v31 }
 0x558   : > { %v1218_v20 = vpop.f32.mrb[21].mxu0  ;;  %v1252_v49 = vmul.f32 %v1997_v21, %v1997_v21 }
 0x559   : > { %v1236_v23 = vadd.f32 %v1235_v22, %v1218_v20  ;;  %v1250_v39 = vmul.f32 %v1218_v20, %v1218_v20  ;;  %v1256_v40 = vadd.f32 %v1255_v11, %v1249_v38  ;;  %v1998_v42 = vpop.f32.mrb[22].mxu0 }
 0x55a   : > { %v1221_v43 = vpop.f32.mrb[23].mxu0  ;;  %v1253_v57 = vmul.f32 %v1998_v42, %v1998_v42 }
 0x55b   : > { %v1257_v44 = vadd.f32 %v1256_v40, %v1250_v39  ;;  %v1237_v46 = vadd.f32 %v1236_v23, %v1221_v43  ;;  %v1251_v48 = vmul.f32 %v1221_v43, %v1221_v43 }
 0x55d   : > { %v1238_v50 = vadd.f32 %v1997_v21, %v1237_v46  ;;  %v1258_v56 = vadd.f32 %v1257_v44, %v1251_v48 }
 0x55f   : > { %v1239_v58 = vadd.f32 %v1998_v42, %v1238_v50  ;;  %v1259_v59 = vadd.f32 %v1258_v56, %v1252_v49 }
 0x561   : > { %v1240_v61 = vrot.slane %v1239_v58, 4  ;;  %v1260_v34 = vadd.f32 %v1259_v59, %v1253_v57 }
 0x563   : > { %v1241_v62 = vadd.f32 %v1240_v61, %v1239_v58  ;;  %v1261_v3 = vrot.slane %v1260_v34, 4 }
 0x565   : > { %v1242_v33 = vrot.slane %v1241_v62, 2  ;;  %v1262_v4 = vadd.f32 %v1261_v3, %v1260_v34 }
 0x567   : > { %v1243_v35 = vadd.f32 %v1242_v33, %v1241_v62  ;;  %v1263_v7 = vrot.slane %v1262_v4, 2 }
 0x569   : > { %v1244_v8 = vrot.slane %v1243_v35, 1  ;;  %v1264_v51 = vadd.f32 %v1263_v7, %v1262_v4 }
 0x56b   : > { %v1245_v10 = vadd.f32 %v1244_v8, %v1243_v35  ;;  %v1265_v13 = vrot.slane %v1264_v51, 1 }
 0x56d   : > { %v1266_v16 = vadd.f32 %v1265_v13, %v1264_v51  ;;  %v1267_v17 = vmul.f32 0.015625, %v1245_v10 }
 0x56f   : > { %v1268_v24 = vmul.f32 0.015625, %v1266_v16  ;;  %v1269_v26 = vmul.f32 %v1267_v17, %v1267_v17 }
 0x571   : > { %v1270_v27 = vsub.f32 %v1268_v24, %v1269_v26 }
 0x573   : > { %v1271_v19 = vmax.f32 %v1270_v27, 0.0 }
 0x575   : > { %v1272_v2 = vadd.f32 1e-05, %v1271_v19 }
 0x577   : > { %2090 = vrsqrt.f32 %v1272_v2 }
 0x581   : > { %v2091_v29 = vpop.eup %2090 }
 0x582   : > { %v1274_v15 = vmul.f32 %v2091_v29, %v2495_v63 }
 0x584   : > { %v1275_v18 = vmul.f32 %v1274_v15, %v1267_v17  ;;  %v1283_v30 = vrot.slane %v1274_v15, %v669_v55 }
 0x586   : > { %v1277_v31 = vrot.slane %v1275_v18, 7  ;;  %v1289_v37 = vmul.f32 %v1283_v30, %v1221_v43  ;;  %v1284_v38 = vmul.f32 %v1283_v30, %v1202_v14  ;;  %v1285_v11 = vmul.f32 %v1283_v30, %v1205_v28 }
 0x587   : > { %v1286_v22 = vmul.f32 %v1993_v1, %v1283_v30  ;;  %v1287_v23 = vmul.f32 %v1994_v12, %v1283_v30  ;;  %v1288_v39 = vmul.f32 %v1283_v30, %v1218_v20  ;;  %v1290_v40 = vmul.f32 %v1997_v21, %v1283_v30 }
 0x588   : > { %v1279_v44 = vsub.f32 %v2495_v63, %v1277_v31  ;;  %v1291_v46 = vmul.f32 %v1998_v42, %v1283_v30 }
 0x58a   : > { %v1295_v48 = vrot.slane %v1279_v44, %v681_v60 }
 0x58c   : > { %v1301_v49 = vadd.f32 %v1295_v48, %v1289_v37  ;;  %v1296_v50 = vadd.f32 %v1295_v48, %v1284_v38  ;;  %v1297_v56 = vadd.f32 %v1295_v48, %v1285_v11  ;;  %v1298_v57 = vadd.f32 %v1295_v48, %v1286_v22 }
 0x58d   : > { %v1299_v58 = vadd.f32 %v1295_v48, %v1287_v23  ;;  %v1300_v55 = vadd.f32 %v1295_v48, %v1288_v39  ;;  %v1302_v59 = vadd.f32 %v1295_v48, %v1290_v40  ;;  %v1303_v43 = vadd.f32 %v1295_v48, %v1291_v46 }
 0x58e   : > { %v1309_v14 = vmax.f32 %v1301_v49, 0.0  ;;  %v1304_v28 = vmax.f32 %v1296_v50, 0.0  ;;  %v1305_v1 = vmax.f32 %v1297_v56, 0.0  ;;  %v1306_v12 = vmax.f32 %v1298_v57, 0.0 }
 0x58f   : > { %v1307_v20 = vmax.f32 %v1299_v58, 0.0  ;;  %v1308_v21 = vmax.f32 %v1300_v55, 0.0  ;;  %v1310_v61 = vmax.f32 %v1302_v59, 0.0  ;;  %v1311_v34 = vmax.f32 %v1303_v43, 0.0 }
 0x590   : > { %v1312_v42 = vpack.c.bf16 %v1305_v1, %v1304_v28 }
 0x591   : > { %v1313_v62 = vpack.c.bf16 %v1307_v20, %v1306_v12  ;;  %v1314_v3 = vpack.c.bf16 %v1309_v14, %v1308_v21  ;;  %v1315_v60 = vpack.c.bf16 %v1311_v34, %v1310_v61 }
 0x592   : > { %2015 = vmatprep.mubr.bf16.mxu1 %v1312_v42 }
 0x593   : > { %2016 = vmatmul.mubr.bf16.vlgmr.msra.gmra.mrb[16].mxu1 %v1313_v62 }
 0x594   : > { %2019 = vmatprep.mubr.bf16.mxu1 %v1314_v3 }
 0x59b   : > { %2020 = vmatmul.mubr.bf16.gmra.mrb[20].mxu1 %v1315_v60 }
 0x666   : > { %v2017_v33 = vpop.f32.mrb[16].mxu1 }
 0x667   : > { %v1398_v4 = vpop.f32.mrb[17].mxu1  ;;  %v1444_v13 = vmul.f32 %v2017_v33, %v2017_v33 }
 0x668   : > { %v2018_v35 = vpop.f32.mrb[18].mxu1  ;;  %v1442_v8 = vmul.f32 %v1398_v4, %v1398_v4 }
 0x669   : > { %v1401_v7 = vpop.f32.mrb[19].mxu1  ;;  %v1445_v24 = vmul.f32 %v2018_v35, %v2018_v35 }
 0x66a   : > { %v1429_v51 = vadd.f32 %v1401_v7, %v1398_v4  ;;  %v1443_v10 = vmul.f32 %v1401_v7, %v1401_v7 }
 0x66c   : > { %v1430_v16 = vadd.f32 %v2017_v33, %v1429_v51  ;;  %v1450_v17 = vadd.f32 %v1443_v10, %v1442_v8 }
 0x66e   : > { %v1451_v26 = vadd.f32 %v1450_v17, %v1444_v13  ;;  %v2021_v27 = vpop.f32.mrb[20].mxu1  ;;  %v1431_v19 = vadd.f32 %v2018_v35, %v1430_v16 }
 0x66f   : > { %v1414_v2 = vpop.f32.mrb[21].mxu1  ;;  %v1448_v22 = vmul.f32 %v2021_v27, %v2021_v27 }
 0x670   : > { %v1432_v29 = vadd.f32 %v1431_v19, %v1414_v2  ;;  %v1446_v15 = vmul.f32 %v1414_v2, %v1414_v2  ;;  %v1452_v18 = vadd.f32 %v1451_v26, %v1445_v24  ;;  %v2022_v30 = vpop.f32.mrb[22].mxu1 }
 0x671   : > { %v1417_v31 = vpop.f32.mrb[23].mxu1  ;;  %v1449_v40 = vmul.f32 %v2022_v30, %v2022_v30 }
 0x672   : > { %v1453_v37 = vadd.f32 %v1452_v18, %v1446_v15  ;;  %v1433_v38 = vadd.f32 %v1432_v29, %v1417_v31  ;;  %v1447_v11 = vmul.f32 %v1417_v31, %v1417_v31 }
 0x674   : > { %v1434_v23 = vadd.f32 %v2021_v27, %v1433_v38  ;;  %v1454_v39 = vadd.f32 %v1453_v37, %v1447_v11 }
 0x676   : > { %v1435_v44 = vadd.f32 %v2022_v30, %v1434_v23  ;;  %v1455_v46 = vadd.f32 %v1454_v39, %v1448_v22 }
 0x678   : > { %v1436_v48 = vrot.slane %v1435_v44, 4  ;;  %v1456_v49 = vadd.f32 %v1455_v46, %v1449_v40 }
 0x67a   : > { %v1437_v50 = vadd.f32 %v1436_v48, %v1435_v44  ;;  %v1457_v56 = vrot.slane %v1456_v49, 4 }
 0x67c   : > { %v1438_v57 = vrot.slane %v1437_v50, 2  ;;  %v1458_v58 = vadd.f32 %v1457_v56, %v1456_v49 }
 0x67e   : > { %v1439_v55 = vadd.f32 %v1438_v57, %v1437_v50  ;;  %v1459_v59 = vrot.slane %v1458_v58, 2 }
 0x680   : > { %v1440_v43 = vrot.slane %v1439_v55, 1  ;;  %v1460_v14 = vadd.f32 %v1459_v59, %v1458_v58 }
 0x682   : > { %v1441_v28 = vadd.f32 %v1440_v43, %v1439_v55  ;;  %v1461_v1 = vrot.slane %v1460_v14, 1 }
 0x684   : > { %v1462_v12 = vadd.f32 %v1461_v1, %v1460_v14  ;;  %v1463_v20 = vmul.f32 0.015625, %v1441_v28 }
 0x686   : > { %v1464_v21 = vmul.f32 0.015625, %v1462_v12  ;;  %v1465_v61 = vmul.f32 %v1463_v20, %v1463_v20 }
 0x688   : > { %v1466_v34 = vsub.f32 %v1464_v21, %v1465_v61 }
 0x68a   : > { %v1467_v42 = vmax.f32 %v1466_v34, 0.0 }
 0x68c   : > { %v1468_v62 = vadd.f32 1e-05, %v1467_v42 }
 0x68e   : > { %2092 = vrsqrt.f32 %v1468_v62 }
 0x698   : > { %v2093_v3 = vpop.eup %2092 }
 0x699   : > { %v1470_v60 = vmul.f32 %v2093_v3, %v2495_v63 }
 0x69b   : > { %v1471_v8 = vmul.f32 %v1470_v60, %v1463_v20  ;;  %v1479_v51 = vrot.slane %v1470_v60, %v865_v32 }
 0x69d   : > { %v1473_v10 = vrot.slane %v1471_v8, 7  ;;  %v1480_v13 = vmul.f32 %v1479_v51, %v1398_v4  ;;  %v1481_v16 = vmul.f32 %v1479_v51, %v1401_v7  ;;  %v1482_v17 = vmul.f32 %v2017_v33, %v1479_v51 }
 0x69e   : > { %v1483_v24 = vmul.f32 %v2018_v35, %v1479_v51  ;;  %v1484_v26 = vmul.f32 %v1479_v51, %v1414_v2  ;;  %v1485_v19 = vmul.f32 %v1479_v51, %v1417_v31  ;;  %v1486_v29 = vmul.f32 %v2021_v27, %v1479_v51 }
 0x69f   : > { %v1475_v15 = vsub.f32 %v2495_v63, %v1473_v10  ;;  %v1487_v18 = vmul.f32 %v2022_v30, %v1479_v51 }
 0x6a1   : > { %v1491_v37 = vrot.slane %v1475_v15, %v877_v41 }
 0x6a3   : > { %v1492_v38 = vadd.f32 %v1491_v37, %v1480_v13  ;;  %v1493_v11 = vadd.f32 %v1491_v37, %v1481_v16  ;;  %v1494_v22 = vadd.f32 %v1491_v37, %v1482_v17  ;;  %v1495_v23 = vadd.f32 %v1491_v37, %v1483_v24 }
 0x6a4   : > { %v1496_v39 = vadd.f32 %v1491_v37, %v1484_v26  ;;  %v1497_v32 = vadd.f32 %v1491_v37, %v1485_v19  ;;  %v1498_v40 = vadd.f32 %v1491_v37, %v1486_v29  ;;  %v1499_v4 = vadd.f32 %v1491_v37, %v1487_v18 }
 0x6a5   : > { %v1500_v7 = vmax.f32 %v1492_v38, 0.0  ;;  %v1501_v33 = vmax.f32 %v1493_v11, 0.0  ;;  %v1502_v35 = vmax.f32 %v1494_v22, 0.0  ;;  %v1503_v2 = vmax.f32 %v1495_v23, 0.0 }
 0x6a6   : > { %v1504_v46 = vmax.f32 %v1496_v39, 0.0  ;;  %v1505_v41 = vmax.f32 %v1497_v32, 0.0  ;;  %v1506_v58 = vmax.f32 %v1498_v40, 0.0  ;;  %v1507_v14 = vmax.f32 %v1499_v4, 0.0 }
 0x6a7   : > { %v1508_v31 = vadd.f32 %v1501_v33, %v1500_v7  ;;  %v1521_v27 = vmul.f32 %v1500_v7, %v1500_v7  ;;  %v1522_v44 = vmul.f32 %v1501_v33, %v1501_v33  ;;  %v1523_v48 = vmul.f32 %v1502_v35, %v1502_v35 }
 0x6a8   : > { %v1524_v56 = vmul.f32 %v1503_v2, %v1503_v2  ;;  %v1525_v59 = vmul.f32 %v1504_v46, %v1504_v46  ;;  %v1526_v1 = vmul.f32 %v1505_v41, %v1505_v41  ;;  %v1527_v21 = vmul.f32 %v1506_v58, %v1506_v58 }
 0x6a9   : > { %v1509_v30 = vadd.f32 %v1508_v31, %v1502_v35  ;;  %v1529_v49 = vadd.f32 %v1522_v44, %v1521_v27  ;;  %v1528_v42 = vmul.f32 %v1507_v14, %v1507_v14  ;;  %v975_v31 = vstv %s974_s19 }
 0x6ab   : > { %v1510_v50 = vadd.f32 %v1509_v30, %v1503_v2  ;;  %v1530_v57 = vadd.f32 %v1529_v49, %v1523_v48 }
 0x6ad   : > { %v1511_v55 = vadd.f32 %v1510_v50, %v1504_v46  ;;  %v1531_v43 = vadd.f32 %v1530_v57, %v1524_v56 }
 0x6af   : > { %v1512_v28 = vadd.f32 %v1511_v55, %v1505_v41  ;;  %v1532_v12 = vadd.f32 %v1531_v43, %v1525_v59  ;;  %v976_v43 = vmul.f32 %v975_v31, %v2421_v5 }
 0x6b1   : > { %v1513_v20 = vadd.f32 %v1512_v28, %v1506_v58  ;;  %v1533_v61 = vadd.f32 %v1532_v12, %v1526_v1  ;;  %v977_v28 = vmul.f32 %v975_v31, %v2423_v47  ;;  %v978_v1 = vmul.f32 %v975_v31, %v2425_v52 }
 0x6b2   : > { %v980_v12 = vmul.f32 %v975_v31, %v2429_v54 }
 0x6b3   : > { %v1514_v34 = vadd.f32 %v1513_v20, %v1507_v14  ;;  %v1534_v62 = vadd.f32 %v1533_v61, %v1527_v21 }
 0x6b5   : > { %v1515_v3 = vrot.slane %v1514_v34, 4  ;;  %v1535_v60 = vadd.f32 %v1534_v62, %v1528_v42 }
 0x6b7   : > { %v1516_v8 = vadd.f32 %v1515_v3, %v1514_v34  ;;  %v1536_v51 = vrot.slane %v1535_v60, 4 }
 0x6b9   : > { %v1517_v10 = vrot.slane %v1516_v8, 2  ;;  %v1537_v13 = vadd.f32 %v1536_v51, %v1535_v60 }
 0x6bb   : > { %v1518_v16 = vadd.f32 %v1517_v10, %v1516_v8  ;;  %v1538_v17 = vrot.slane %v1537_v13, 2 }
 0x6bd   : > { %v1519_v24 = vrot.slane %v1518_v16, 1  ;;  %v1539_v26 = vadd.f32 %v1538_v17, %v1537_v13 }
 0x6bf   : > { %v1520_v19 = vadd.f32 %v1519_v24, %v1518_v16  ;;  %v1540_v29 = vrot.slane %v1539_v26, 1 }
 0x6c1   : > { %v1541_v15 = vadd.f32 %v1540_v29, %v1539_v26  ;;  %v1542_v18 = vmul.f32 0.015625, %v1520_v19 }
 0x6c3   : > { %v1543_v37 = vmul.f32 0.015625, %v1541_v15  ;;  %v1544_v38 = vmul.f32 %v1542_v18, %v1542_v18 }
 0x6c5   : > { %v1545_v11 = vsub.f32 %v1543_v37, %v1544_v38 }
 0x6c7   : > { %v1546_v22 = vmax.f32 %v1545_v11, 0.0 }
 0x6c9   : > { %v1547_v23 = vadd.f32 1e-05, %v1546_v22 }
 0x6cb   : > { %2094 = vrsqrt.f32 %v1547_v23 }
 0x6d5   : > { %v2095_v39 = vpop.eup %2094 }
 0x6d6   : > { %v1549_v32 = vmul.f32 %v2095_v39, %v2495_v63 }
 0x6d8   : > { %v1550_v40 = vmul.f32 %v1549_v32, %v1542_v18  ;;  %v1558_v4 = vrot.slane %v1549_v32, %v944_v36  ;;  %v979_v36 = vmul.f32 %v975_v31, %v2427_v6 }
 0x6da   : > { %v1552_v27 = vrot.slane %v1550_v40, 7  ;;  %v1559_v44 = vmul.f32 %v1558_v4, %v1500_v7  ;;  %v1560_v30 = vmul.f32 %v1558_v4, %v1501_v33  ;;  %v1561_v48 = vmul.f32 %v1558_v4, %v1502_v35 }
 0x6db   : > { %v1562_v49 = vmul.f32 %v1558_v4, %v1503_v2  ;;  %v1563_v50 = vmul.f32 %v1558_v4, %v1504_v46  ;;  %v1564_v56 = vmul.f32 %v1558_v4, %v1505_v41  ;;  %v1565_v57 = vmul.f32 %v1558_v4, %v1506_v58 }
 0x6dc   : > { %v1554_v55 = vsub.f32 %v2495_v63, %v1552_v27  ;;  %v1566_v59 = vmul.f32 %v1558_v4, %v1507_v14  ;;  %v981_v7 = vmul.f32 %v975_v31, %v2431_v9  ;;  %v982_v35 = vmul.f32 %v975_v31, %v2433_v25 }
 0x6dd   : > { %v983_v63 = vmul.f32 %v975_v31, %v2435_v0  ;;  %v1596_v2 = vstv %s1825_s20  ;;  %v1630_v46 = vstv %s1629_s21 }
 0x6de   : > { %v1570_v33 = vrot.slane %v1554_v55, %v956_v45 }
 0x6e0   : > { %v1571_v5 = vadd.f32 %v1570_v33, %v1559_v44  ;;  %v1572_v41 = vadd.f32 %v1570_v33, %v1560_v30  ;;  %v1573_v47 = vadd.f32 %v1570_v33, %v1561_v48  ;;  %v1574_v58 = vadd.f32 %v1570_v33, %v1562_v49 }
 0x6e1   : > { %v1575_v52 = vadd.f32 %v1570_v33, %v1563_v50  ;;  %v1576_v14 = vadd.f32 %v1570_v33, %v1564_v56  ;;  %v1577_v6 = vadd.f32 %v1570_v33, %v1565_v57  ;;  %v1578_v20 = vadd.f32 %v1570_v33, %v1566_v59 }
 0x6e2   : > { %v1579_v54 = vmax.f32 %v1571_v5, 0.0  ;;  %v1580_v21 = vmax.f32 %v1572_v41, 0.0  ;;  %v1581_v9 = vmax.f32 %v1573_v47, 0.0  ;;  %v1582_v61 = vmax.f32 %v1574_v58, 0.0 }
 0x6e3   : > { %v1583_v53 = vmax.f32 %v1575_v52, 0.0  ;;  %v1584_v45 = vmax.f32 %v1576_v14, 0.0  ;;  %v1585_v25 = vmax.f32 %v1577_v6, 0.0  ;;  %v1586_v34 = vmax.f32 %v1578_v20, 0.0 }
 0x6e4   : > { %v1597_v0 = vmul.f32 %v1596_v2, %v1579_v54  ;;  %v1598_v42 = vmul.f32 %v1596_v2, %v1580_v21  ;;  %v1599_v62 = vmul.f32 %v1596_v2, %v1581_v9  ;;  %v1600_v3 = vmul.f32 %v1596_v2, %v1582_v61 }
 0x6e5   : > { %v1601_v60 = vmul.f32 %v1596_v2, %v1583_v53  ;;  %v1602_v8 = vmul.f32 %v1596_v2, %v1584_v45  ;;  %v1603_v51 = vmul.f32 %v1596_v2, %v1585_v25  ;;  %v1604_v10 = vmul.f32 %v1596_v2, %v1586_v34 }
 0x6e6   : > { %v1605_v13 = vadd.f32 %v1597_v0, %v976_v43  ;;  %v1606_v16 = vadd.f32 %v1598_v42, %v977_v28  ;;  %v1607_v17 = vadd.f32 %v1599_v62, %v978_v1  ;;  %v1608_v24 = vadd.f32 %v1600_v3, %v979_v36 }
 0x6e7   : > { %v1609_v26 = vadd.f32 %v1601_v60, %v980_v12  ;;  %v1610_v19 = vadd.f32 %v1602_v8, %v981_v7  ;;  %v1611_v29 = vadd.f32 %v1603_v51, %v982_v35  ;;  %v1612_v15 = vadd.f32 %v1604_v10, %v983_v63 }
 0x6e8   : > { %v1631_v18 = vadd.f32 %v1630_v46, %v1605_v13  ;;  %v1632_v37 = vadd.f32 %v1630_v46, %v1606_v16  ;;  %v1633_v38 = vadd.f32 %v1630_v46, %v1607_v17  ;;  %v1634_v11 = vadd.f32 %v1630_v46, %v1608_v24 }
 0x6e9   : > { %v1635_v22 = vadd.f32 %v1630_v46, %v1609_v26  ;;  %v1636_v23 = vadd.f32 %v1630_v46, %v1610_v19  ;;  %v1637_v39 = vadd.f32 %v1630_v46, %v1611_v29  ;;  %v1638_v32 = vadd.f32 %v1630_v46, %v1612_v15 }
 0x6ea   : > { %1639 = vst [vmem:[%s353_s25] sm:$0xff] %v1631_v18  ;;  %1640 = vst [vmem:[%s353_s25 + $0x8] sm:$0xff] %v1632_v37 }
 0x6eb   : > { %1641 = vst [vmem:[%s353_s25 + $0x10] sm:$0xff] %v1633_v38  ;;  %1642 = vst [vmem:[%s353_s25 + $0x18] sm:$0xff] %v1634_v11 }
 0x6ec   : > { %1643 = vst [vmem:[%s353_s25 + $0x20] sm:$0xff] %v1635_v22  ;;  %1644 = vst [vmem:[%s353_s25 + $0x28] sm:$0xff] %v1636_v23 }
 0x6ed   : > { %1645 = vst [vmem:[%s353_s25 + $0x30] sm:$0xff] %v1637_v39  ;;  %1646 = vst [vmem:[%s353_s25 + $0x38] sm:$0xff] %v1638_v32 }
 0x6ee PF: > { %s21_s29 = sadd.s32 1, %s2140_s29  }
 0x6ef   : > { %p18_p5 = scmp.ge.s32.totalorder %s21_s29, 6  }
 0x6f1   :  { %20 = sbr.rel (!%p18_p5) target bundleno = 4 (0x4), region = 97 }
 0x6f8   :  { %1668 = vsyncpa [#allocation4], 1 }
 0x6f9   :  { %1670 = vsyncpa [#allocation4 + $0x1], 1 }
 0x6fa   :  { %1671 = vsyncpa [#allocation6], 1 }

</bundles_post_ra>
